<compile_context>
chip_gen: v5e
topology: v5e:2x2
jax: 0.10.0
libtpu: 0.0.40
codegen_flags: <defaults>
</compile_context>

<pallas_src>
import functools
import numpy as np
import jax
import jax.numpy as jnp
from jax.experimental import pallas as pl
from jax.experimental.pallas import tpu as pltpu


def _leaky_relu(x):
    return jnp.where(x >= 0, x, 0.01 * x)   # nn.LeakyReLU default slope


def cal_padding(h, w, k):
    h_pad = (h - 1) + k - h
    w_pad = (w - 1) + k - w
    return int(np.ceil(h_pad / 2)), int(np.ceil(w_pad / 2))


def _build_conv_taps(H, W, K, h_pad, w_pad):
    """Static per-tap lane shifts (np.roll convention) and 0/1 boundary masks."""
    HW = H * W
    ii = np.repeat(np.arange(H), W)          # output row index per flat lane
    jj = np.tile(np.arange(W), H)            # output col index per flat lane
    masks = np.zeros((K * K, HW), np.float32)
    shifts = []
    for kh in range(K):
        dh = kh - h_pad
        for kw in range(K):
            dw = kw - w_pad
            valid = (ii + dh >= 0) & (ii + dh < H) & (jj + dw >= 0) & (jj + dw < W)
            masks[kh * K + kw] = valid.astype(np.float32)
            shifts.append(int((-(dh * W + dw)) % HW))
    return masks, tuple(shifts)


def _block_diag(*ms):
    rows = sum(m.shape[0] for m in ms)
    cols = sum(m.shape[1] for m in ms)
    out = jnp.zeros((rows, cols), jnp.float32)
    r = c = 0
    for m in ms:
        out = out.at[r:r + m.shape[0], c:c + m.shape[1]].set(m.astype(jnp.float32))
        r += m.shape[0]
        c += m.shape[1]
    return out


def _pick_block_b(batch, bytes_per_batch, *, target_bytes=1 << 20, min_split_bytes=1 << 20):
    """Largest divisor of `batch` whose input slab stays under `target_bytes`
    (double-buffered in+out then fits the default scoped VMEM on v5e/v6e/v7x).
    Splitting into >=2 grid steps (so both v7x TensorCores get work) is only
    preferred when each block would still carry >= min_split_bytes of input;
    for tiny batches a single big step avoids pure per-step overhead."""
    divisors = [d for d in range(1, batch + 1) if batch % d == 0]
    fitting = [d for d in divisors if d * bytes_per_batch <= target_bytes] or [1]
    best = max(fitting)
    if best == batch and batch > 1:
        split = [d for d in fitting if batch // d >= 2]
        if split and max(split) * bytes_per_batch >= min_split_bytes:
            best = max(split)
    return best


# ---------------------------------------------------------------------------
# Fused kernel: channel ("linear squeeze") attention + spatial ("cov squeeze")
# attention, fully batched over a block of `block_b` batches.
# ---------------------------------------------------------------------------
def _fused_kernel(x_ref, w1_ref, b1_ref, w2_ref, b2_ref, mask_ref, cvec_ref, o_ref,
                  *, D, shifts):
    Bb, C2D, HW = x_ref.shape
    n_taps = len(shifts)
    inv_hw = 1.0 / HW
    inv_d = 1.0 / D

    x = x_ref[...]                                    # (Bb, 2D, HW), loaded once

    # ---- stage 1: channel ("linear squeeze") attention, batched over the block ----
    p_avg = jnp.sum(x, axis=-1) * inv_hw              # (Bb, 2D) lane reductions
    p_max = jnp.max(x, axis=-1)                       # (Bb, 2D)
    v = jnp.concatenate([p_avg, p_max], axis=-1)      # (Bb, 4D): [avg_c0|avg_c1|max_c0|max_c1]
    h = jnp.dot(v, w1_ref[...], preferred_element_type=jnp.float32) + b1_ref[...]
    h = _leaky_relu(h)                                # (Bb, 4*mid)
    o = jnp.dot(h, w2_ref[...], preferred_element_type=jnp.float32) + b2_ref[...]
    # double sigmoid (per path, then on the sum) matches the PyTorch module
    gate1 = jax.nn.sigmoid(jax.nn.sigmoid(o[:, :C2D]) + jax.nn.sigmoid(o[:, C2D:]))
    x1 = x * gate1[:, :, None]                        # (Bb, 2D, HW), broadcast over lanes

    # ---- stage 2: spatial ("cov squeeze") attention, batched over the block -------
    planes = []                                       # p = c*2 + d (d: 0 = max, 1 = avg)
    for c in range(2):
        xc = x1[:, c * D:(c + 1) * D, :]              # (Bb, D, HW)
        planes.append(jnp.max(xc, axis=1, keepdims=True))            # (Bb, 1, HW)
        planes.append(jnp.sum(xc, axis=1, keepdims=True) * inv_d)    # (Bb, 1, HW)

    acc = jnp.zeros((Bb, 1, HW), jnp.float32)
    for t in range(n_taps):                           # t = kh*K + kw, weights from SMEM
        comb = (cvec_ref[0 * n_taps + t] * planes[0]  # fold scalar weights first,
                + cvec_ref[1 * n_taps + t] * planes[1]
                + cvec_ref[2 * n_taps + t] * planes[2]
                + cvec_ref[3 * n_taps + t] * planes[3])
        if shifts[t]:
            comb = pltpu.roll(comb, shifts[t], axis=2)                # one XLU lane rotate
        acc = acc + comb * mask_ref[t:t + 1, :]       # precomputed 0/1 boundary mask
    gate2 = jax.nn.sigmoid(acc + cvec_ref[4 * n_taps])                # (Bb, 1, HW)

    o_ref[...] = x1 * gate2                           # one lane-dense store per block


# ---------------------------------------------------------------------------
# Wrapper (weight packing, block policy, pallas_call plumbing)
# ---------------------------------------------------------------------------
def cov_block_attention_forward(x, params, sqe_kernel_size, *, block_b=None):
    B, C, D, H, W = x.shape
    assert C == 2, "CovBlockAttentionNet requires 2 input channels"
    K = sqe_kernel_size
    assert K % 2 == 1, "odd sqe_kernel_size assumed (shape-preserving conv)"
    h_pad, w_pad = cal_padding(H, W, K)
    C2D, HW = C * D, H * W
    f32 = jnp.float32

    xa = x.reshape(B, C2D, HW).astype(f32)

    if block_b is None:
        block_b = _pick_block_b(B, bytes_per_batch=C2D * HW * 4)
    assert B % block_b == 0

    # SE MLPs: fold avg/max paths + 2-channel weight sharing into two
    # block-diagonal matrices -> 2 dots per grid step instead of 4 tiny ones.
    aW1, aW2 = jnp.asarray(params['aW1'], f32), jnp.asarray(params['aW2'], f32)
    mW1, mW2 = jnp.asarray(params['mW1'], f32), jnp.asarray(params['mW2'], f32)
    ab1, ab2 = jnp.asarray(params['ab1'], f32), jnp.asarray(params['ab2'], f32)
    mb1, mb2 = jnp.asarray(params['mb1'], f32), jnp.asarray(params['mb2'], f32)
    W1_all = _block_diag(aW1.T, aW1.T, mW1.T, mW1.T)           # (4D, 4*mid)
    W2_all = _block_diag(aW2.T, aW2.T, mW2.T, mW2.T)           # (4*mid, 4D)
    b1_all = jnp.concatenate([ab1, ab1, mb1, mb1]).reshape(1, -1).astype(f32)
    b2_all = jnp.concatenate([ab2, ab2, mb2, mb2]).reshape(1, -1).astype(f32)

    # Conv taps: static lane shifts (baked into the kernel) + precomputed 0/1
    # boundary masks (one VMEM input); conv weights + bias in one SMEM vector,
    # flat index ((c*2 + d)*K + kh)*K + kw, bias last.
    masks_np, shifts = _build_conv_taps(H, W, K, h_pad, w_pad)
    mask = jnp.asarray(masks_np)                               # (K*K, HW)
    cvec = jnp.concatenate([jnp.asarray(params['cw'], f32).reshape(-1),
                            jnp.asarray(params['cb'], f32).reshape(-1)])

    kernel = functools.partial(_fused_kernel, D=D, shifts=shifts)

    def const_spec(a):
        nd = a.ndim
        return pl.BlockSpec(a.shape, lambda b, nd=nd: (0,) * nd)

    # ~1 MiB input blocks keep the double-buffered in+out footprint well inside
    # the default scoped-VMEM limit on v5e/v6e/v7x, so vmem_limit_bytes is left
    # at its default.
    out = pl.pallas_call(
        kernel,
        grid=(B // block_b,),
        in_specs=[pl.BlockSpec((block_b, C2D, HW), lambda b: (b, 0, 0)),
                  const_spec(W1_all), const_spec(b1_all),
                  const_spec(W2_all), const_spec(b2_all),
                  const_spec(mask),
                  pl.BlockSpec(memory_space=pltpu.MemorySpace.SMEM)],
        out_specs=pl.BlockSpec((block_b, C2D, HW), lambda b: (b, 0, 0)),
        out_shape=jax.ShapeDtypeStruct((B, C2D, HW), f32),
        compiler_params=pltpu.CompilerParams(dimension_semantics=("parallel",)),
    )(xa, W1_all, b1_all, W2_all, b2_all, mask, cvec)

    return out.reshape(B, C, D, H, W)


# ---------------------------------------------------------------------------
# Pure-JAX reference (numerical sanity check, mirrors the PyTorch module)
# ---------------------------------------------------------------------------
def ref_forward(x, p, K, h_pad, w_pad):
    B, C, D, H, W = x.shape
    avg_p = jnp.mean(x, axis=(3, 4))        # AdaptiveAvgPool3d((D,1,1)) with D == wind
    max_p = jnp.max(x, axis=(3, 4))

    def mlp(v, W1, b1, W2, b2):
        h = jnp.sum(v[..., None, :] * W1, axis=-1) + b1
        h = _leaky_relu(h)
        o = jnp.sum(h[..., None, :] * W2, axis=-1) + b2
        return jax.nn.sigmoid(o)

    gate1 = jax.nn.sigmoid(mlp(avg_p, p['aW1'], p['ab1'], p['aW2'], p['ab2'])
                           + mlp(max_p, p['mW1'], p['mb1'], p['mW2'], p['mb2']))
    x1 = x * gate1[:, :, :, None, None]

    maxD = jnp.max(x1, axis=2)              # AdaptiveMaxPool3d((1,H,W))
    avgD = jnp.mean(x1, axis=2)
    stacked = jnp.stack([maxD, avgD], axis=2)        # (B, 2, 2, H, W)
    padded = jnp.pad(stacked, ((0, 0), (0, 0), (0, 0),
                               (h_pad, h_pad), (w_pad, w_pad)))
    out = jnp.zeros((B, H, W), jnp.float32) + p['cb'][0]
    for c in range(2):
        for d in range(2):
            for kh in range(K):
                for kw in range(K):
                    out = out + p['cw'][0, c, d, kh, kw] * padded[:, c, d, kh:kh + H, kw:kw + W]
    gate2 = jax.nn.sigmoid(out)[:, None, None]       # (B, 1, 1, H, W)
    return x1 * gate2


def init_params(key, wind, r, K):
    mid = int(np.ceil(wind / r))
    ks = jax.random.split(key, 10)
    f = lambda k, shape: (0.3 * jax.random.normal(k, shape)).astype(jnp.float32)
    return {
        'aW1': f(ks[0], (mid, wind)), 'ab1': f(ks[1], (mid,)),
        'aW2': f(ks[2], (wind, mid)), 'ab2': f(ks[3], (wind,)),
        'mW1': f(ks[4], (mid, wind)), 'mb1': f(ks[5], (mid,)),
        'mW2': f(ks[6], (wind, mid)), 'mb2': f(ks[7], (wind,)),
        'cw': f(ks[8], (1, 2, 2, K, K)), 'cb': f(ks[9], (1,)),
    }


if __name__ == "__main__":
    B, C, wind_size, H, W = 2, 2, 8, 16, 16   # data_h = H, data_w = W, D = wind_size
    r, K = 2, 3

    key = jax.random.PRNGKey(0)
    kx, kp = jax.random.split(key)
    x = jax.random.normal(kx, (B, C, wind_size, H, W), dtype=jnp.float32)
    params = init_params(kp, wind_size, r, K)

    out = cov_block_attention_forward(x, params, K)
    out = jax.block_until_ready(out)

    h_pad, w_pad = cal_padding(H, W, K)
    ref = ref_forward(x, params, K, h_pad, w_pad)
    assert out.shape == x.shape
    err = float(jnp.max(jnp.abs(out - ref)))
    assert err < 5e-3, f"max abs err {err}"
    print("KERNEL_OK")
</pallas_src>

<mosaic_0001>
module attributes {stable_mosaic.version = 11 : i64} {
  func.func @_fused_kernel(%arg0: i32, %arg1: memref<2x16x256xf32, #tpu.memory_space<vmem>>, %arg2: memref<32x16xf32, #tpu.memory_space<vmem>>, %arg3: memref<1x16xf32, #tpu.memory_space<vmem>>, %arg4: memref<16x32xf32, #tpu.memory_space<vmem>>, %arg5: memref<1x32xf32, #tpu.memory_space<vmem>>, %arg6: memref<9x256xf32, #tpu.memory_space<vmem>>, %arg7: memref<37xf32, #tpu.memory_space<smem>>, %arg8: memref<2x16x256xf32, #tpu.memory_space<vmem>>) attributes {dimension_semantics = [#tpu.dimension_semantics<parallel>], iteration_bounds = array<i64: 1>, scalar_prefetch = 0 : i64, scratch_operands = 0 : i64, tpu.core_type = #tpu.core_type<tc>, window_params = [{transform_indices = @transform_0, window_bounds = array<i64: 2, 16, 256>}, {pipeline_mode = #tpu.pipeline_mode<synchronous>, transform_indices = @transform_1, window_bounds = array<i64: 32, 16>}, {pipeline_mode = #tpu.pipeline_mode<synchronous>, transform_indices = @transform_2, window_bounds = array<i64: 1, 16>}, {pipeline_mode = #tpu.pipeline_mode<synchronous>, transform_indices = @transform_3, window_bounds = array<i64: 16, 32>}, {pipeline_mode = #tpu.pipeline_mode<synchronous>, transform_indices = @transform_4, window_bounds = array<i64: 1, 32>}, {pipeline_mode = #tpu.pipeline_mode<synchronous>, transform_indices = @transform_5, window_bounds = array<i64: 9, 256>}, {transform_indices = @transform_6, window_bounds = array<i64: 37>}, {transform_indices = @transform_7, window_bounds = array<i64: 2, 16, 256>}]} {
    %c0 = arith.constant 0 : index
    %c0_0 = arith.constant 0 : index
    %c0_1 = arith.constant 0 : index
    %0 = vector.load %arg1[%c0, %c0_0, %c0_1] : memref<2x16x256xf32, #tpu.memory_space<vmem>>, vector<2x16x256xf32>
    %cst = arith.constant dense<0.000000e+00> : vector<2x16xf32>
    %1 = vector.multi_reduction <add>, %0, %cst [2] : vector<2x16x256xf32> to vector<2x16xf32>
    %cst_2 = arith.constant 3.906250e-03 : f32
    %2 = vector.broadcast %cst_2 : f32 to vector<2x16xf32>
    %3 = arith.mulf %1, %2 : vector<2x16xf32>
    %cst_3 = arith.constant dense<0xFF800000> : vector<2x16xf32>
    %4 = vector.multi_reduction <maximumf>, %0, %cst_3 [2] : vector<2x16x256xf32> to vector<2x16xf32>
    %5 = tpu.concatenate %3, %4 in 1 : vector<2x16xf32>, vector<2x16xf32> -> vector<2x32xf32>
    %c0_4 = arith.constant 0 : index
    %c0_5 = arith.constant 0 : index
    %6 = vector.load %arg2[%c0_4, %c0_5] : memref<32x16xf32, #tpu.memory_space<vmem>>, vector<32x16xf32>
    %cst_6 = arith.constant dense<0.000000e+00> : vector<2x16xf32>
    %7 = tpu.matmul %5, %6, %cst_6 {dimension_numbers = #tpu.dot_dimension_numbers<[1], [0], [0], [1], [0, 0, 1, 1], [], []>} : vector<2x32xf32>, vector<32x16xf32>, vector<2x16xf32> -> vector<2x16xf32>
    %c0_7 = arith.constant 0 : index
    %c0_8 = arith.constant 0 : index
    %8 = vector.load %arg3[%c0_7, %c0_8] : memref<1x16xf32, #tpu.memory_space<vmem>>, vector<1x16xf32>
    %9 = vector.broadcast %8 : vector<1x16xf32> to vector<2x16xf32>
    %10 = arith.addf %7, %9 : vector<2x16xf32>
    %cst_9 = arith.constant 0.000000e+00 : f32
    %11 = vector.broadcast %cst_9 : f32 to vector<2x16xf32>
    %12 = arith.cmpf oge, %10, %11 : vector<2x16xf32>
    %cst_10 = arith.constant 0.00999999977 : f32
    %13 = vector.broadcast %cst_10 : f32 to vector<2x16xf32>
    %14 = arith.mulf %13, %10 : vector<2x16xf32>
    %15 = arith.select %12, %10, %14 : vector<2x16xi1>, vector<2x16xf32>
    %c0_11 = arith.constant 0 : index
    %c0_12 = arith.constant 0 : index
    %16 = vector.load %arg4[%c0_11, %c0_12] : memref<16x32xf32, #tpu.memory_space<vmem>>, vector<16x32xf32>
    %cst_13 = arith.constant dense<0.000000e+00> : vector<2x32xf32>
    %17 = tpu.matmul %15, %16, %cst_13 {dimension_numbers = #tpu.dot_dimension_numbers<[1], [0], [0], [1], [0, 0, 1, 1], [], []>} : vector<2x16xf32>, vector<16x32xf32>, vector<2x32xf32> -> vector<2x32xf32>
    %c0_14 = arith.constant 0 : index
    %c0_15 = arith.constant 0 : index
    %18 = vector.load %arg5[%c0_14, %c0_15] : memref<1x32xf32, #tpu.memory_space<vmem>>, vector<1x32xf32>
    %19 = vector.broadcast %18 : vector<1x32xf32> to vector<2x32xf32>
    %20 = arith.addf %17, %19 : vector<2x32xf32>
    %21 = vector.extract_strided_slice %20 {offsets = [0, 0], sizes = [2, 16], strides = [1, 1]} : vector<2x32xf32> to vector<2x16xf32>
    %22 = arith.negf %21 : vector<2x16xf32>
    %23 = math.exp %22 : vector<2x16xf32>
    %cst_16 = arith.constant 1.000000e+00 : f32
    %24 = vector.broadcast %cst_16 : f32 to vector<2x16xf32>
    %25 = arith.addf %24, %23 : vector<2x16xf32>
    %26 = arith.divf %24, %25 : vector<2x16xf32>
    %27 = vector.extract_strided_slice %20 {offsets = [0, 16], sizes = [2, 16], strides = [1, 1]} : vector<2x32xf32> to vector<2x16xf32>
    %28 = arith.negf %27 : vector<2x16xf32>
    %29 = math.exp %28 : vector<2x16xf32>
    %cst_17 = arith.constant 1.000000e+00 : f32
    %30 = vector.broadcast %cst_17 : f32 to vector<2x16xf32>
    %31 = arith.addf %30, %29 : vector<2x16xf32>
    %32 = arith.divf %30, %31 : vector<2x16xf32>
    %33 = arith.addf %26, %32 : vector<2x16xf32>
    %34 = arith.negf %33 : vector<2x16xf32>
    %35 = math.exp %34 : vector<2x16xf32>
    %cst_18 = arith.constant 1.000000e+00 : f32
    %36 = vector.broadcast %cst_18 : f32 to vector<2x16xf32>
    %37 = arith.addf %36, %35 : vector<2x16xf32>
    %38 = arith.divf %36, %37 : vector<2x16xf32>
    %39 = vector.shape_cast %38 : vector<2x16xf32> to vector<2x16x1xf32>
    %40 = vector.broadcast %39 : vector<2x16x1xf32> to vector<2x16x256xf32>
    %41 = arith.mulf %0, %40 : vector<2x16x256xf32>
    %42 = vector.extract_strided_slice %41 {offsets = [0, 0, 0], sizes = [2, 8, 256], strides = [1, 1, 1]} : vector<2x16x256xf32> to vector<2x8x256xf32>
    %cst_19 = arith.constant dense<0xFF800000> : vector<2x256xf32>
    %43 = vector.multi_reduction <maximumf>, %42, %cst_19 [1] : vector<2x8x256xf32> to vector<2x256xf32>
    %44 = vector.shape_cast %43 : vector<2x256xf32> to vector<2x1x256xf32>
    %cst_20 = arith.constant dense<0.000000e+00> : vector<2x256xf32>
    %45 = vector.multi_reduction <add>, %42, %cst_20 [1] : vector<2x8x256xf32> to vector<2x256xf32>
    %46 = vector.shape_cast %45 : vector<2x256xf32> to vector<2x1x256xf32>
    %cst_21 = arith.constant 1.250000e-01 : f32
    %47 = vector.broadcast %cst_21 : f32 to vector<2x1x256xf32>
    %48 = arith.mulf %46, %47 : vector<2x1x256xf32>
    %49 = vector.extract_strided_slice %41 {offsets = [0, 8, 0], sizes = [2, 8, 256], strides = [1, 1, 1]} : vector<2x16x256xf32> to vector<2x8x256xf32>
    %cst_22 = arith.constant dense<0xFF800000> : vector<2x256xf32>
    %50 = vector.multi_reduction <maximumf>, %49, %cst_22 [1] : vector<2x8x256xf32> to vector<2x256xf32>
    %51 = vector.shape_cast %50 : vector<2x256xf32> to vector<2x1x256xf32>
    %cst_23 = arith.constant dense<0.000000e+00> : vector<2x256xf32>
    %52 = vector.multi_reduction <add>, %49, %cst_23 [1] : vector<2x8x256xf32> to vector<2x256xf32>
    %53 = vector.shape_cast %52 : vector<2x256xf32> to vector<2x1x256xf32>
    %cst_24 = arith.constant 1.250000e-01 : f32
    %54 = vector.broadcast %cst_24 : f32 to vector<2x1x256xf32>
    %55 = arith.mulf %53, %54 : vector<2x1x256xf32>
    %cst_25 = arith.constant 0.000000e+00 : f32
    %56 = vector.broadcast %cst_25 : f32 to vector<2x1x256xf32>
    %c0_26 = arith.constant 0 : index
    %57 = memref.load %arg7[%c0_26] : memref<37xf32, #tpu.memory_space<smem>>
    %58 = vector.broadcast %57 : f32 to vector<2x1x256xf32>
    %59 = arith.mulf %58, %44 : vector<2x1x256xf32>
    %c9 = arith.constant 9 : index
    %60 = memref.load %arg7[%c9] : memref<37xf32, #tpu.memory_space<smem>>
    %61 = vector.broadcast %60 : f32 to vector<2x1x256xf32>
    %62 = arith.mulf %61, %48 : vector<2x1x256xf32>
    %63 = arith.addf %59, %62 : vector<2x1x256xf32>
    %c18 = arith.constant 18 : index
    %64 = memref.load %arg7[%c18] : memref<37xf32, #tpu.memory_space<smem>>
    %65 = vector.broadcast %64 : f32 to vector<2x1x256xf32>
    %66 = arith.mulf %65, %51 : vector<2x1x256xf32>
    %67 = arith.addf %63, %66 : vector<2x1x256xf32>
    %c27 = arith.constant 27 : index
    %68 = memref.load %arg7[%c27] : memref<37xf32, #tpu.memory_space<smem>>
    %69 = vector.broadcast %68 : f32 to vector<2x1x256xf32>
    %70 = arith.mulf %69, %55 : vector<2x1x256xf32>
    %71 = arith.addf %67, %70 : vector<2x1x256xf32>
    %c17_i32 = arith.constant 17 : i32
    %72 = tpu.dynamic_rotate %71 by %c17_i32 dim 2 : vector<2x1x256xf32>, i32 -> vector<2x1x256xf32>
    %c0_27 = arith.constant 0 : index
    %c0_28 = arith.constant 0 : index
    %73 = vector.load %arg6[%c0_27, %c0_28] : memref<9x256xf32, #tpu.memory_space<vmem>>, vector<1x256xf32>
    %74 = vector.shape_cast %73 : vector<1x256xf32> to vector<1x1x256xf32>
    %75 = vector.broadcast %74 : vector<1x1x256xf32> to vector<2x1x256xf32>
    %76 = arith.mulf %72, %75 : vector<2x1x256xf32>
    %77 = arith.addf %56, %76 : vector<2x1x256xf32>
    %c1 = arith.constant 1 : index
    %78 = memref.load %arg7[%c1] : memref<37xf32, #tpu.memory_space<smem>>
    %79 = vector.broadcast %78 : f32 to vector<2x1x256xf32>
    %80 = arith.mulf %79, %44 : vector<2x1x256xf32>
    %c10 = arith.constant 10 : index
    %81 = memref.load %arg7[%c10] : memref<37xf32, #tpu.memory_space<smem>>
    %82 = vector.broadcast %81 : f32 to vector<2x1x256xf32>
    %83 = arith.mulf %82, %48 : vector<2x1x256xf32>
    %84 = arith.addf %80, %83 : vector<2x1x256xf32>
    %c19 = arith.constant 19 : index
    %85 = memref.load %arg7[%c19] : memref<37xf32, #tpu.memory_space<smem>>
    %86 = vector.broadcast %85 : f32 to vector<2x1x256xf32>
    %87 = arith.mulf %86, %51 : vector<2x1x256xf32>
    %88 = arith.addf %84, %87 : vector<2x1x256xf32>
    %c28 = arith.constant 28 : index
    %89 = memref.load %arg7[%c28] : memref<37xf32, #tpu.memory_space<smem>>
    %90 = vector.broadcast %89 : f32 to vector<2x1x256xf32>
    %91 = arith.mulf %90, %55 : vector<2x1x256xf32>
    %92 = arith.addf %88, %91 : vector<2x1x256xf32>
    %c16_i32 = arith.constant 16 : i32
    %93 = tpu.dynamic_rotate %92 by %c16_i32 dim 2 : vector<2x1x256xf32>, i32 -> vector<2x1x256xf32>
    %c1_29 = arith.constant 1 : index
    %c0_30 = arith.constant 0 : index
    %94 = vector.load %arg6[%c1_29, %c0_30] : memref<9x256xf32, #tpu.memory_space<vmem>>, vector<1x256xf32>
    %95 = vector.shape_cast %94 : vector<1x256xf32> to vector<1x1x256xf32>
    %96 = vector.broadcast %95 : vector<1x1x256xf32> to vector<2x1x256xf32>
    %97 = arith.mulf %93, %96 : vector<2x1x256xf32>
    %98 = arith.addf %77, %97 : vector<2x1x256xf32>
    %c2 = arith.constant 2 : index
    %99 = memref.load %arg7[%c2] : memref<37xf32, #tpu.memory_space<smem>>
    %100 = vector.broadcast %99 : f32 to vector<2x1x256xf32>
    %101 = arith.mulf %100, %44 : vector<2x1x256xf32>
    %c11 = arith.constant 11 : index
    %102 = memref.load %arg7[%c11] : memref<37xf32, #tpu.memory_space<smem>>
    %103 = vector.broadcast %102 : f32 to vector<2x1x256xf32>
    %104 = arith.mulf %103, %48 : vector<2x1x256xf32>
    %105 = arith.addf %101, %104 : vector<2x1x256xf32>
    %c20 = arith.constant 20 : index
    %106 = memref.load %arg7[%c20] : memref<37xf32, #tpu.memory_space<smem>>
    %107 = vector.broadcast %106 : f32 to vector<2x1x256xf32>
    %108 = arith.mulf %107, %51 : vector<2x1x256xf32>
    %109 = arith.addf %105, %108 : vector<2x1x256xf32>
    %c29 = arith.constant 29 : index
    %110 = memref.load %arg7[%c29] : memref<37xf32, #tpu.memory_space<smem>>
    %111 = vector.broadcast %110 : f32 to vector<2x1x256xf32>
    %112 = arith.mulf %111, %55 : vector<2x1x256xf32>
    %113 = arith.addf %109, %112 : vector<2x1x256xf32>
    %c15_i32 = arith.constant 15 : i32
    %114 = tpu.dynamic_rotate %113 by %c15_i32 dim 2 : vector<2x1x256xf32>, i32 -> vector<2x1x256xf32>
    %c2_31 = arith.constant 2 : index
    %c0_32 = arith.constant 0 : index
    %115 = vector.load %arg6[%c2_31, %c0_32] : memref<9x256xf32, #tpu.memory_space<vmem>>, vector<1x256xf32>
    %116 = vector.shape_cast %115 : vector<1x256xf32> to vector<1x1x256xf32>
    %117 = vector.broadcast %116 : vector<1x1x256xf32> to vector<2x1x256xf32>
    %118 = arith.mulf %114, %117 : vector<2x1x256xf32>
    %119 = arith.addf %98, %118 : vector<2x1x256xf32>
    %c3 = arith.constant 3 : index
    %120 = memref.load %arg7[%c3] : memref<37xf32, #tpu.memory_space<smem>>
    %121 = vector.broadcast %120 : f32 to vector<2x1x256xf32>
    %122 = arith.mulf %121, %44 : vector<2x1x256xf32>
    %c12 = arith.constant 12 : index
    %123 = memref.load %arg7[%c12] : memref<37xf32, #tpu.memory_space<smem>>
    %124 = vector.broadcast %123 : f32 to vector<2x1x256xf32>
    %125 = arith.mulf %124, %48 : vector<2x1x256xf32>
    %126 = arith.addf %122, %125 : vector<2x1x256xf32>
    %c21 = arith.constant 21 : index
    %127 = memref.load %arg7[%c21] : memref<37xf32, #tpu.memory_space<smem>>
    %128 = vector.broadcast %127 : f32 to vector<2x1x256xf32>
    %129 = arith.mulf %128, %51 : vector<2x1x256xf32>
    %130 = arith.addf %126, %129 : vector<2x1x256xf32>
    %c30 = arith.constant 30 : index
    %131 = memref.load %arg7[%c30] : memref<37xf32, #tpu.memory_space<smem>>
    %132 = vector.broadcast %131 : f32 to vector<2x1x256xf32>
    %133 = arith.mulf %132, %55 : vector<2x1x256xf32>
    %134 = arith.addf %130, %133 : vector<2x1x256xf32>
    %c1_i32 = arith.constant 1 : i32
    %135 = tpu.dynamic_rotate %134 by %c1_i32 dim 2 : vector<2x1x256xf32>, i32 -> vector<2x1x256xf32>
    %c3_33 = arith.constant 3 : index
    %c0_34 = arith.constant 0 : index
    %136 = vector.load %arg6[%c3_33, %c0_34] : memref<9x256xf32, #tpu.memory_space<vmem>>, vector<1x256xf32>
    %137 = vector.shape_cast %136 : vector<1x256xf32> to vector<1x1x256xf32>
    %138 = vector.broadcast %137 : vector<1x1x256xf32> to vector<2x1x256xf32>
    %139 = arith.mulf %135, %138 : vector<2x1x256xf32>
    %140 = arith.addf %119, %139 : vector<2x1x256xf32>
    %c4 = arith.constant 4 : index
    %141 = memref.load %arg7[%c4] : memref<37xf32, #tpu.memory_space<smem>>
    %142 = vector.broadcast %141 : f32 to vector<2x1x256xf32>
    %143 = arith.mulf %142, %44 : vector<2x1x256xf32>
    %c13 = arith.constant 13 : index
    %144 = memref.load %arg7[%c13] : memref<37xf32, #tpu.memory_space<smem>>
    %145 = vector.broadcast %144 : f32 to vector<2x1x256xf32>
    %146 = arith.mulf %145, %48 : vector<2x1x256xf32>
    %147 = arith.addf %143, %146 : vector<2x1x256xf32>
    %c22 = arith.constant 22 : index
    %148 = memref.load %arg7[%c22] : memref<37xf32, #tpu.memory_space<smem>>
    %149 = vector.broadcast %148 : f32 to vector<2x1x256xf32>
    %150 = arith.mulf %149, %51 : vector<2x1x256xf32>
    %151 = arith.addf %147, %150 : vector<2x1x256xf32>
    %c31 = arith.constant 31 : index
    %152 = memref.load %arg7[%c31] : memref<37xf32, #tpu.memory_space<smem>>
    %153 = vector.broadcast %152 : f32 to vector<2x1x256xf32>
    %154 = arith.mulf %153, %55 : vector<2x1x256xf32>
    %155 = arith.addf %151, %154 : vector<2x1x256xf32>
    %c4_35 = arith.constant 4 : index
    %c0_36 = arith.constant 0 : index
    %156 = vector.load %arg6[%c4_35, %c0_36] : memref<9x256xf32, #tpu.memory_space<vmem>>, vector<1x256xf32>
    %157 = vector.shape_cast %156 : vector<1x256xf32> to vector<1x1x256xf32>
    %158 = vector.broadcast %157 : vector<1x1x256xf32> to vector<2x1x256xf32>
    %159 = arith.mulf %155, %158 : vector<2x1x256xf32>
    %160 = arith.addf %140, %159 : vector<2x1x256xf32>
    %c5 = arith.constant 5 : index
    %161 = memref.load %arg7[%c5] : memref<37xf32, #tpu.memory_space<smem>>
    %162 = vector.broadcast %161 : f32 to vector<2x1x256xf32>
    %163 = arith.mulf %162, %44 : vector<2x1x256xf32>
    %c14 = arith.constant 14 : index
    %164 = memref.load %arg7[%c14] : memref<37xf32, #tpu.memory_space<smem>>
    %165 = vector.broadcast %164 : f32 to vector<2x1x256xf32>
    %166 = arith.mulf %165, %48 : vector<2x1x256xf32>
    %167 = arith.addf %163, %166 : vector<2x1x256xf32>
    %c23 = arith.constant 23 : index
    %168 = memref.load %arg7[%c23] : memref<37xf32, #tpu.memory_space<smem>>
    %169 = vector.broadcast %168 : f32 to vector<2x1x256xf32>
    %170 = arith.mulf %169, %51 : vector<2x1x256xf32>
    %171 = arith.addf %167, %170 : vector<2x1x256xf32>
    %c32 = arith.constant 32 : index
    %172 = memref.load %arg7[%c32] : memref<37xf32, #tpu.memory_space<smem>>
    %173 = vector.broadcast %172 : f32 to vector<2x1x256xf32>
    %174 = arith.mulf %173, %55 : vector<2x1x256xf32>
    %175 = arith.addf %171, %174 : vector<2x1x256xf32>
    %c255_i32 = arith.constant 255 : i32
    %176 = tpu.dynamic_rotate %175 by %c255_i32 dim 2 : vector<2x1x256xf32>, i32 -> vector<2x1x256xf32>
    %c5_37 = arith.constant 5 : index
    %c0_38 = arith.constant 0 : index
    %177 = vector.load %arg6[%c5_37, %c0_38] : memref<9x256xf32, #tpu.memory_space<vmem>>, vector<1x256xf32>
    %178 = vector.shape_cast %177 : vector<1x256xf32> to vector<1x1x256xf32>
    %179 = vector.broadcast %178 : vector<1x1x256xf32> to vector<2x1x256xf32>
    %180 = arith.mulf %176, %179 : vector<2x1x256xf32>
    %181 = arith.addf %160, %180 : vector<2x1x256xf32>
    %c6 = arith.constant 6 : index
    %182 = memref.load %arg7[%c6] : memref<37xf32, #tpu.memory_space<smem>>
    %183 = vector.broadcast %182 : f32 to vector<2x1x256xf32>
    %184 = arith.mulf %183, %44 : vector<2x1x256xf32>
    %c15 = arith.constant 15 : index
    %185 = memref.load %arg7[%c15] : memref<37xf32, #tpu.memory_space<smem>>
    %186 = vector.broadcast %185 : f32 to vector<2x1x256xf32>
    %187 = arith.mulf %186, %48 : vector<2x1x256xf32>
    %188 = arith.addf %184, %187 : vector<2x1x256xf32>
    %c24 = arith.constant 24 : index
    %189 = memref.load %arg7[%c24] : memref<37xf32, #tpu.memory_space<smem>>
    %190 = vector.broadcast %189 : f32 to vector<2x1x256xf32>
    %191 = arith.mulf %190, %51 : vector<2x1x256xf32>
    %192 = arith.addf %188, %191 : vector<2x1x256xf32>
    %c33 = arith.constant 33 : index
    %193 = memref.load %arg7[%c33] : memref<37xf32, #tpu.memory_space<smem>>
    %194 = vector.broadcast %193 : f32 to vector<2x1x256xf32>
    %195 = arith.mulf %194, %55 : vector<2x1x256xf32>
    %196 = arith.addf %192, %195 : vector<2x1x256xf32>
    %c241_i32 = arith.constant 241 : i32
    %197 = tpu.dynamic_rotate %196 by %c241_i32 dim 2 : vector<2x1x256xf32>, i32 -> vector<2x1x256xf32>
    %c6_39 = arith.constant 6 : index
    %c0_40 = arith.constant 0 : index
    %198 = vector.load %arg6[%c6_39, %c0_40] : memref<9x256xf32, #tpu.memory_space<vmem>>, vector<1x256xf32>
    %199 = vector.shape_cast %198 : vector<1x256xf32> to vector<1x1x256xf32>
    %200 = vector.broadcast %199 : vector<1x1x256xf32> to vector<2x1x256xf32>
    %201 = arith.mulf %197, %200 : vector<2x1x256xf32>
    %202 = arith.addf %181, %201 : vector<2x1x256xf32>
    %c7 = arith.constant 7 : index
    %203 = memref.load %arg7[%c7] : memref<37xf32, #tpu.memory_space<smem>>
    %204 = vector.broadcast %203 : f32 to vector<2x1x256xf32>
    %205 = arith.mulf %204, %44 : vector<2x1x256xf32>
    %c16 = arith.constant 16 : index
    %206 = memref.load %arg7[%c16] : memref<37xf32, #tpu.memory_space<smem>>
    %207 = vector.broadcast %206 : f32 to vector<2x1x256xf32>
    %208 = arith.mulf %207, %48 : vector<2x1x256xf32>
    %209 = arith.addf %205, %208 : vector<2x1x256xf32>
    %c25 = arith.constant 25 : index
    %210 = memref.load %arg7[%c25] : memref<37xf32, #tpu.memory_space<smem>>
    %211 = vector.broadcast %210 : f32 to vector<2x1x256xf32>
    %212 = arith.mulf %211, %51 : vector<2x1x256xf32>
    %213 = arith.addf %209, %212 : vector<2x1x256xf32>
    %c34 = arith.constant 34 : index
    %214 = memref.load %arg7[%c34] : memref<37xf32, #tpu.memory_space<smem>>
    %215 = vector.broadcast %214 : f32 to vector<2x1x256xf32>
    %216 = arith.mulf %215, %55 : vector<2x1x256xf32>
    %217 = arith.addf %213, %216 : vector<2x1x256xf32>
    %c240_i32 = arith.constant 240 : i32
    %218 = tpu.dynamic_rotate %217 by %c240_i32 dim 2 : vector<2x1x256xf32>, i32 -> vector<2x1x256xf32>
    %c7_41 = arith.constant 7 : index
    %c0_42 = arith.constant 0 : index
    %219 = vector.load %arg6[%c7_41, %c0_42] : memref<9x256xf32, #tpu.memory_space<vmem>>, vector<1x256xf32>
    %220 = vector.shape_cast %219 : vector<1x256xf32> to vector<1x1x256xf32>
    %221 = vector.broadcast %220 : vector<1x1x256xf32> to vector<2x1x256xf32>
    %222 = arith.mulf %218, %221 : vector<2x1x256xf32>
    %223 = arith.addf %202, %222 : vector<2x1x256xf32>
    %c8 = arith.constant 8 : index
    %224 = memref.load %arg7[%c8] : memref<37xf32, #tpu.memory_space<smem>>
    %225 = vector.broadcast %224 : f32 to vector<2x1x256xf32>
    %226 = arith.mulf %225, %44 : vector<2x1x256xf32>
    %c17 = arith.constant 17 : index
    %227 = memref.load %arg7[%c17] : memref<37xf32, #tpu.memory_space<smem>>
    %228 = vector.broadcast %227 : f32 to vector<2x1x256xf32>
    %229 = arith.mulf %228, %48 : vector<2x1x256xf32>
    %230 = arith.addf %226, %229 : vector<2x1x256xf32>
    %c26 = arith.constant 26 : index
    %231 = memref.load %arg7[%c26] : memref<37xf32, #tpu.memory_space<smem>>
    %232 = vector.broadcast %231 : f32 to vector<2x1x256xf32>
    %233 = arith.mulf %232, %51 : vector<2x1x256xf32>
    %234 = arith.addf %230, %233 : vector<2x1x256xf32>
    %c35 = arith.constant 35 : index
    %235 = memref.load %arg7[%c35] : memref<37xf32, #tpu.memory_space<smem>>
    %236 = vector.broadcast %235 : f32 to vector<2x1x256xf32>
    %237 = arith.mulf %236, %55 : vector<2x1x256xf32>
    %238 = arith.addf %234, %237 : vector<2x1x256xf32>
    %c239_i32 = arith.constant 239 : i32
    %239 = tpu.dynamic_rotate %238 by %c239_i32 dim 2 : vector<2x1x256xf32>, i32 -> vector<2x1x256xf32>
    %c8_43 = arith.constant 8 : index
    %c0_44 = arith.constant 0 : index
    %240 = vector.load %arg6[%c8_43, %c0_44] : memref<9x256xf32, #tpu.memory_space<vmem>>, vector<1x256xf32>
    %241 = vector.shape_cast %240 : vector<1x256xf32> to vector<1x1x256xf32>
    %242 = vector.broadcast %241 : vector<1x1x256xf32> to vector<2x1x256xf32>
    %243 = arith.mulf %239, %242 : vector<2x1x256xf32>
    %244 = arith.addf %223, %243 : vector<2x1x256xf32>
    %c36 = arith.constant 36 : index
    %245 = memref.load %arg7[%c36] : memref<37xf32, #tpu.memory_space<smem>>
    %246 = vector.broadcast %245 : f32 to vector<2x1x256xf32>
    %247 = arith.addf %244, %246 : vector<2x1x256xf32>
    %248 = arith.negf %247 : vector<2x1x256xf32>
    %249 = math.exp %248 : vector<2x1x256xf32>
    %cst_45 = arith.constant 1.000000e+00 : f32
    %250 = vector.broadcast %cst_45 : f32 to vector<2x1x256xf32>
    %251 = arith.addf %250, %249 : vector<2x1x256xf32>
    %252 = arith.divf %250, %251 : vector<2x1x256xf32>
    %253 = vector.broadcast %252 : vector<2x1x256xf32> to vector<2x16x256xf32>
    %254 = arith.mulf %41, %253 : vector<2x16x256xf32>
    %c0_46 = arith.constant 0 : index
    %c0_47 = arith.constant 0 : index
    %c0_48 = arith.constant 0 : index
    %255 = vector.load %arg8[%c0_46, %c0_47, %c0_48] : memref<2x16x256xf32, #tpu.memory_space<vmem>>, vector<2x16x256xf32>
    tpu.vector_store %arg8[%c0_46, %c0_47, %c0_48], %254 {strides = array<i32>} : memref<2x16x256xf32, #tpu.memory_space<vmem>>, vector<2x16x256xf32>,
    return
  }
  func.func @transform_0(%arg0: i32) -> (i32, i32, i32) {
    %c0_i32 = arith.constant 0 : i32
    %c0_i32_0 = arith.constant 0 : i32
    %c0_i32_1 = arith.constant 0 : i32
    return %arg0, %c0_i32, %c0_i32_0 : i32, i32, i32
  }
  func.func @transform_1(%arg0: i32) -> (i32, i32) {
    %c0_i32 = arith.constant 0 : i32
    %c0_i32_0 = arith.constant 0 : i32
    %c0_i32_1 = arith.constant 0 : i32
    return %c0_i32, %c0_i32_0 : i32, i32
  }
  func.func @transform_2(%arg0: i32) -> (i32, i32) {
    %c0_i32 = arith.constant 0 : i32
    %c0_i32_0 = arith.constant 0 : i32
    %c0_i32_1 = arith.constant 0 : i32
    return %c0_i32, %c0_i32_0 : i32, i32
  }
  func.func @transform_3(%arg0: i32) -> (i32, i32) {
    %c0_i32 = arith.constant 0 : i32
    %c0_i32_0 = arith.constant 0 : i32
    %c0_i32_1 = arith.constant 0 : i32
    return %c0_i32, %c0_i32_0 : i32, i32
  }
  func.func @transform_4(%arg0: i32) -> (i32, i32) {
    %c0_i32 = arith.constant 0 : i32
    %c0_i32_0 = arith.constant 0 : i32
    %c0_i32_1 = arith.constant 0 : i32
    return %c0_i32, %c0_i32_0 : i32, i32
  }
  func.func @transform_5(%arg0: i32) -> (i32, i32) {
    %c0_i32 = arith.constant 0 : i32
    %c0_i32_0 = arith.constant 0 : i32
    %c0_i32_1 = arith.constant 0 : i32
    return %c0_i32, %c0_i32_0 : i32, i32
  }
  func.func @transform_6(%arg0: i32) -> i32 {
    %c0_i32 = arith.constant 0 : i32
    %c0_i32_0 = arith.constant 0 : i32
    return %c0_i32 : i32
  }
  func.func @transform_7(%arg0: i32) -> (i32, i32, i32) {
    %c0_i32 = arith.constant 0 : i32
    %c0_i32_0 = arith.constant 0 : i32
    %c0_i32_1 = arith.constant 0 : i32
    return %arg0, %c0_i32, %c0_i32_0 : i32, i32, i32
  }
}

</mosaic_0001>

<bundles_post_ra>
// kernel: tpu_custom_call.1
= control target key start
LH: loop header
LB: loop body
LE: loop exit
PB: predicated region body
PF: predicated region fallthrough
CT: control target
= control target key end

     0   :  { %12 = vsyncpa [#allocation3], 0  ;;  %s2099_s0 = inlined_call_operand.hbm [shape: f32[2,16,256], index: 0, kind: input, shape index: {}]   ;;  %s2100_s1 = inlined_call_operand.vmem [shape: f32[32,16], index: 1, kind: input, shape index: {}]   ;;  %s2101_s2 = inlined_call_operand.vmem [shape: f32[1,16], index: 2, kind: input, shape index: {}]   ;;  %s2102_s3 = inlined_call_operand.vmem [shape: f32[16,32], index: 3, kind: input, shape index: {}]   ;;  %s2103_s4 = inlined_call_operand.vmem [shape: f32[1,32], index: 4, kind: input, shape index: {}]   ;;  %s2104_s5 = inlined_call_operand.vmem [shape: f32[9,256], index: 5, kind: input, shape index: {}]   ;;  %s2105_s6 = inlined_call_operand.vmem [shape: f32[37], index: 6, kind: input, shape index: {}]   ;;  %s2106_s7 = inlined_call_operand.hbm [shape: f32[2,16,256], index: 7, kind: output, shape index: {}]  }
   0x1   :  { %13 = vsyncpa [#allocation5], 0 }
   0x2   :  { %14 = vsyncpa [#allocation4], 0  ;;  %s19_s26 = sshll.u32 %s2099_s0, 4  ;;  %s1215_s27 = smov [#allocation2]   ;;  %s20_s26 = int_to_ptr.hbm [resolvable:$true] %s19_s26 }
   0x3   :  { %s21_s28 = sshll.u32 %s1215_s27, 4  ;;  %s43_s8 = sshll.u32 %s2105_s6, 4  ;;  %s22_s28 = int_to_ptr.vmem [resolvable:$true] %s21_s28  ;;  %s44_s8 = int_to_ptr.vmem [resolvable:$true] %s43_s8 }
   0x4   :  { %s1216_s9 = smov 256   ;;  %s1217_s10 = smov 16  }
   0x5   :  { %27 = dma.hbm_to_vmem [thread:$0]  %s20_s26, 1024, %s22_s28, [#allocation3], %s1216_s9, %s1216_s9, %s1217_s10  }
   0x6   :  { %s1218_s11 = smov [#allocation6]  }
   0x7   :  { %46 = dma.vmem_to_smem %s44_s8, 16, %s1218_s11, [#allocation5]  }
   0x8   :  { %1209 = dma.done.wait [#allocation3], 1024  }
   0x9   :  { %1210 = vsyncadd [#allocation3], 4294966272 }
   0xa   :  { %1211 = dma.done.wait [#allocation5], 16  }
   0xb   :  { %1212 = vsyncadd [#allocation5], 4294967280 }
   0xc   :  { %55 = sfence }
   0xd   :  { %v1276_v0 = vld [vmem:[#allocation2 + $0x20] sm:$0xff]  ;;  %v1278_v1 = vld [vmem:[#allocation2 + $0x28] sm:$0xff]  ;;  %v1290_v7 = vld [vmem:[#allocation2 + $0x30] sm:$0xff]  ;;  %v96_v23 = vlaneseq  ;;  %vm101_vm0 = vcmask 130112   ;;  %vm117_vm1 = vcmask 261312   ;;  %vm106_vm2 = vcmask 1041409  }
   0xe   :  { %v1280_v2 = vld [vmem:[#allocation2] sm:$0xff]  ;;  %v70_v3 = vadd.f32 %v1278_v1, %v1276_v0  ;;  %v1284_v4 = vld [vmem:[#allocation2 + $0x8] sm:$0xff]  ;;  %v1292_v8 = vld [vmem:[#allocation2 + $0x38] sm:$0xff]  ;;  %v86_v15 = vmax.f32 %v1276_v0, %v1278_v1  ;;  %vm124_vm3 = vcmask 130048   ;;  %vm134_vm4 = vcmask 261120   ;;  %s1061_s25 = sld [smem:[#allocation6 + $0x1b]] }
   0xf   :  { %v80_v5 = vmax.f32 %v1280_v2, %v1284_v4  ;;  %v64_v6 = vadd.f32 %v1284_v4, %v1280_v2  ;;  %v1294_v9 = vld [vmem:[#allocation2 + $0x10] sm:$0xff]  ;;  %v1296_v10 = vld [vmem:[#allocation2 + $0x18] sm:$0xff]  ;;  %v73_v11 = vadd.f32 %v1292_v8, %v1290_v7  ;;  %v89_v14 = vmax.f32 %v1290_v7, %v1292_v8  ;;  %v127_v18 = vld [vmem:[%s2100_s1 + $0x8] sm:$0xff]  ;;  %s371_s26 = sld [smem:[#allocation6]]  ;;  %s1220_s12 = smov 17  }
  0x10   :  { %71 = vadd.xlane.f32.xlu1 %v70_v3  ;;  %v83_v12 = vmax.f32 %v1294_v9, %v1296_v10  ;;  %v67_v13 = vadd.f32 %v1296_v10, %v1294_v9  ;;  %v129_v16 = vld [vmem:[%s2100_s1 + $0x18] sm:$0xff]  ;;  %v128_v17 = vld [vmem:[%s2100_s1 + $0x10] sm:$0xff]  ;;  %v126_v19 = vld [vmem:[%s2100_s1] sm:$0xff]  ;;  %v1321_v24 = vand.u32 127, %v96_v23  ;;  %s1062_s27 = sld [smem:[#allocation6 + $0x1]]  ;;  %s1221_s20 = smov 15  }
  0x11   :  { %81 = vmax.xlane.f32.xlu2 %v80_v5  ;;  %65 = vadd.xlane.f32.xlu0 %v64_v6  ;;  %v162_v52 = vld [vmem:[%s2102_s3 + $0x8] sm:$0xff]  ;;  %v161_v53 = vld [vmem:[%s2102_s3] sm:$0xff]  ;;  %s1060_s3 = sld [smem:[#allocation6 + $0x12]] }
  0x12   :  { %150 = vmatpush.msra.mxu0 %v129_v16  ;;  %v99_v27 = vadd.s32 4294967288, %v1321_v24  ;;  %v113_v31 = vadd.s32 4294967280, %v1321_v24  ;;  %v115_v33 = vadd.s32 4294967272, %v1321_v24  ;;  %184 = vmatpush.msra.mxu1 %v162_v52  ;;  %v1123_v54 = vld [vmem:[%s2101_s2] ss:$0 sm:$0xff]  ;;  %s1219_s2 = smov 112  }
  0x13   :  { %v1124_v59 = vld [vmem:[%s2103_s4] ss:$0 sm:$0xff]  ;;  %s1362_s4 = sld [smem:[#allocation6 + $0x13]]  ;;  %vm415_vm14 = vcmp.lt.s32.totalorder %v1321_v24, 17  ;;  %vm478_vm15 = vcmp.lt.s32.totalorder %v1321_v24, 16 }
  0x14   :  { %151 = vmatpush.msra.mxu0 %v128_v17  ;;  %185 = vmatpush.msra.mxu1 %v161_v53  ;;  %s1059_s28 = sld [smem:[#allocation6 + $0x9]] }
  0x15   :  { %s1063_s29 = sld [smem:[#allocation6 + $0xa]] }
  0x16   :  { %152 = vmatpush.msra.mxu0 %v127_v18  ;;  %s1427_s30 = sld [smem:[#allocation6 + $0xb]] }
  0x17   :  { %s1453_s8 = sld [smem:[#allocation6 + $0x2]] }
  0x18   :  { %74 = vadd.xlane.f32.xlu1 %v73_v11  ;;  %153 = vmatpush.msra.mxu0 %v126_v19  ;;  %v235_v19 = vshrl.u32 %v96_v23, 7  ;;  %s1463_s11 = sld [smem:[#allocation6 + $0x1c]] }
  0x19   :  { %84 = vmax.xlane.f32.xlu2 %v83_v12  ;;  %68 = vadd.xlane.f32.xlu0 %v67_v13  ;;  %s1486_s0 = sld [smem:[#allocation6 + $0x14]] }
  0x1a   :  { %1120 = vset.pattern.permute.xlu1 %v235_v19  ;;  %1119 = vset.pattern.permute.xlu0 %v235_v19  ;;  %s1488_s6 = sld [smem:[#allocation6 + $0xc]] }
  0x1b   :  { %s1502_s13 = sld [smem:[#allocation6 + $0x3]] }
  0x1c   :  { %s1510_s14 = sld [smem:[#allocation6 + $0x1d]] }
  0x1d   :  { %s1522_s15 = sld [smem:[#allocation6 + $0x15]] }
  0x1e   :  { %s1536_s16 = sld [smem:[#allocation6 + $0x1e]] }
  0x1f   :  { %s1545_s17 = sld [smem:[#allocation6 + $0xe]] }
  0x20   :  { %90 = vmax.xlane.f32.xlu1 %v89_v14  ;;  %s1552_s1 = sld [smem:[#allocation6 + $0x5]] }
  0x21   :  { %87 = vmax.xlane.f32.xlu0 %v86_v15  ;;  %s1574_s18 = sld [smem:[#allocation6 + $0x17]] }
  0x22   :  { %s1585_s19 = sld [smem:[#allocation6 + $0x20]] }
  0x23   :  { %s1598_s21 = sld [smem:[#allocation6 + $0x7]] }
  0x24   :  { %s1606_s22 = sld [smem:[#allocation6 + $0x10]] }
  0x25   :  { %s1616_s23 = sld [smem:[#allocation6 + $0xf]] }
  0x26   :  { %s1626_s24 = sld [smem:[#allocation6 + $0x6]] }
  0x83   :  { %v72_v20 = vpop.xlane.xlu1 %71 }
  0x84   :  { %v66_v21 = vpop.xlane.xlu0 %65  ;;  %v82_v22 = vpop.xlane.xlu2 %81  ;;  %v78_v30 = vmul.f32 0.00390625, %v72_v20  ;;  %v242_v20 = vadd.s32 8, %v235_v19  ;;  %v1375_v19 = vstv %s1362_s4  ;;  %s1222_s4 = smov 1  }
  0x85   :  { %v76_v32 = vmul.f32 0.00390625, %v66_v21  ;;  %v114_v38 = vperm.slane %v82_v22, %v113_v31 }
  0x86   :  { %v103_v37 = vperm.slane %v78_v30, %v1321_v24  ;;  %1121 = vset.pattern.permute.xlu2 %v242_v20 }
  0x87   :  { %v98_v39 = vperm.slane %v76_v32, %v1321_v24 }
  0x8b   :  { %v75_v25 = vpop.xlane.xlu1 %74 }
  0x8c   :  { %v69_v26 = vpop.xlane.xlu0 %68  ;;  %v79_v28 = vmul.f32 0.00390625, %v75_v25  ;;  %v85_v34 = vpop.xlane.xlu2 %84 }
  0x8d   :  { %v77_v29 = vmul.f32 0.00390625, %v69_v26  ;;  %v116_v40 = vperm.slane %v85_v34, %v115_v33 }
  0x8e   :  { %v104_v35 = vperm.slane %v79_v28, %v99_v27 }
  0x8f   :  { %v100_v36 = vperm.slane %v77_v29, %v99_v27  ;;  %v118_v47 = vsel %vm117_vm1, %v116_v40, %v114_v38 }
  0x90   :  { %v105_v46 = vsel %vm101_vm0, %v104_v35, %v103_v37 }
  0x91   :  { %v102_v45 = vsel %vm101_vm0, %v100_v36, %v98_v39  ;;  %vm606_vm0 = vcmp.lt.s32.totalorder %v1321_v24, 1 }
  0x92   :  { %v107_v49 = vsel %vm106_vm2, %v105_v46, %v102_v45 }
  0x93   :  { %v91_v41 = vpop.xlane.xlu1 %90 }
  0x94   :  { %v120_v42 = vperm.slane %v91_v41, %v115_v33  ;;  %v88_v43 = vpop.xlane.xlu0 %87 }
  0x95   :  { %v119_v44 = vperm.slane %v88_v43, %v113_v31 }
  0x97   :  { %v121_v48 = vsel %vm117_vm1, %v120_v42, %v119_v44  ;;  %vm542_vm1 = vcmp.lt.s32.totalorder %v1321_v24, 15 }
  0x98   :  { %v122_v50 = vsel %vm106_vm2, %v121_v48, %v118_v47  ;;  %vm721_vm2 = vcmp.lt.s32.totalorder %v1321_v24, 127 }
  0x99   :  { %v125_v51 = vsel %vm124_vm3, %v107_v49, %v122_v50 }
  0x9a   :  { %1055 = vmatmul.msk.f32.vlgmr.msra.gmra.mxu0 %vm134_vm4, %v125_v51  ;;  %vm849_vm4 = vcmp.lt.s32.totalorder %v1321_v24, 112 }
 0x117   :  { %v155_v55 = vpop.f32.mrf.mxu0 }
 0x118   :  { %v156_v56 = vadd.f32 %v1123_v54, %v155_v55 }
 0x11a   :  { %v159_v57 = vmul.f32 0.01, %v156_v56  ;;  %vm158_vm5 = vcmp.ge.f32.partialorder %v156_v56, 0.0 }
 0x11c   :  { %v160_v58 = vsel %vm158_vm5, %v156_v56, %v159_v57  ;;  %vm913_vm5 = vcmp.lt.s32.totalorder %v1321_v24, 111 }
 0x11d   :  { %1056 = vmatmul.msk.f32.vlgmr.msra.gmra.mxu1 %vm124_vm3, %v160_v58  ;;  %vm785_vm3 = vcmp.lt.s32.totalorder %v1321_v24, 113 }
 0x19a   :  { %v187_v60 = vpop.f32.mrf.mxu1 }
 0x19b   :  { %v188_v61 = vadd.f32 %v1124_v59, %v187_v60 }
 0x19d   :  { %v1057_v62 = vmul.f32 -1.442695, %v188_v61 }
 0x19f   :  { %1125 = vpow2.f32 %v1057_v62 }
 0x1a5   :  { %v1126_v63 = vpop.eup %1125 }
 0x1a6   :  { %v193_v3 = vadd.f32 1.0, %v1126_v63 }
 0x1a8   :  { %1127 = vrcp.f32 %v193_v3  ;;  %v205_v12 = vand.u32 2147483648, %v193_v3  ;;  %v203_v14 = vand.u32 2147483647, %v193_v3  ;;  %vm199_vm7 = vweird.f32 %v193_v3 }
 0x1aa   :  { %v206_v16 = vor.u32 1.1754944e-38, %v205_v12  ;;  %vm204_vm9 = vcmp.eq.f32.partialorder %v203_v14, 8.507059e+37 }
 0x1ae   :  { %v1128_v5 = vpop.eup %1127 }
 0x1af   :  { %v195_v6 = vmul.f32 %v1128_v5, %v193_v3  ;;  %vm200_vm6 = vweird.f32 %v1128_v5 }
 0x1b0   :  { %vm201_vm8 = vmor %vm199_vm7, %vm200_vm6 }
 0x1b1   :  { %v196_v11 = vsub.f32 1.0, %v195_v6 }
 0x1b3   :  { %v197_v13 = vmul.f32 %v1128_v5, %v196_v11 }
 0x1b5   :  { %v198_v15 = vadd.f32 %v1128_v5, %v197_v13 }
 0x1b7   :  { %v202_v17 = vsel %vm201_vm8, %v1128_v5, %v198_v15  ;;  %v1370_v15 = vstv %s1060_s3  ;;  %s1639_s3 = sld [smem:[#allocation6 + $0x18]] }
 0x1b8   :  { %v207_v18 = vsel %vm204_vm9, %v206_v16, %v202_v17 }
 0x1b9   :  { %210 = vrot.lane.b32.xlu2 %v207_v18, %s1219_s2 }
 0x213   :  { %v211_v21 = vpop.permute.xlu2 %210 }
 0x214   :  { %v213_v22 = vadd.f32 %v211_v21, %v207_v18  ;;  %v1372_v18 = vstv %s1061_s25  ;;  %s1652_s25 = sld [smem:[#allocation6 + $0x8]] }
 0x216   :  { %v1058_v25 = vmul.f32 -1.442695, %v213_v22  ;;  %v1377_v22 = vstv %s371_s26  ;;  %s1657_s26 = sld [smem:[#allocation6 + $0x21]] }
 0x218   :  { %1129 = vpow2.f32 %v1058_v25  ;;  %v1379_v25 = vstv %s1059_s28  ;;  %s1722_s28 = sld [smem:[#allocation6 + $0x4]] }
 0x21e   :  { %v1130_v26 = vpop.eup %1129 }
 0x21f   :  { %v217_v27 = vadd.f32 1.0, %v1130_v26 }
 0x221   :  { %1131 = vrcp.f32 %v217_v27  ;;  %v229_v31 = vand.u32 2147483648, %v217_v27  ;;  %v227_v33 = vand.u32 2147483647, %v217_v27  ;;  %vm223_vm11 = vweird.f32 %v217_v27 }
 0x223   :  { %v230_v23 = vor.u32 1.1754944e-38, %v229_v31  ;;  %vm228_vm13 = vcmp.eq.f32.partialorder %v227_v33, 8.507059e+37 }
 0x227   :  { %v1132_v28 = vpop.eup %1131 }
 0x228   :  { %v219_v29 = vmul.f32 %v1132_v28, %v217_v27  ;;  %vm224_vm10 = vweird.f32 %v1132_v28 }
 0x229   :  { %vm225_vm12 = vmor %vm223_vm11, %vm224_vm10 }
 0x22a   :  { %v220_v30 = vsub.f32 1.0, %v219_v29  ;;  %v1381_v29 = vstv %s1062_s27  ;;  %s1667_s27 = sld [smem:[#allocation6 + $0x11]] }
 0x22c   :  { %v221_v32 = vmul.f32 %v1132_v28, %v220_v30  ;;  %v1383_v30 = vstv %s1063_s29  ;;  %s1728_s29 = sld [smem:[#allocation6 + $0x19]] }
 0x22e   :  { %v222_v34 = vadd.f32 %v1132_v28, %v221_v32 }
 0x230   :  { %v226_v35 = vsel %vm225_vm12, %v1132_v28, %v222_v34 }
 0x231   :  { %v231_v36 = vsel %vm228_vm13, %v230_v23, %v226_v35 }
 0x232   :  { %v246_v37 = vperm.slane %v231_v36, 1  ;;  %v233_v38 = vperm.slane %v231_v36, 0 }
 0x234   :  { %251 = vperm.xlu1 %1120, %v246_v37   ;;  %244 = vperm.xlu2 %1121, %v233_v38  }
 0x235   :  { %238 = vperm.xlu0 %1119, %v233_v38  }
 0x23c   :  { %257 = vperm.xlu2 %1121, %v246_v37  }
 0x23d   :  { %1122 = vset.pattern.permute.xlu0 %v242_v20 }
 0x28e   :  { %v245_v39 = vpop.permute.xlu2 %244 }
 0x28f   :  { %v1345_v40 = vmul.f32 %v245_v39, %v1294_v9  ;;  %v1348_v41 = vmul.f32 %v245_v39, %v1296_v10 }
 0x291   :  { %v319_v42 = vrot.slane %v1345_v40, 4  ;;  %v325_v43 = vrot.slane %v1348_v41, 4 }
 0x293   :  { %v344_v44 = vadd.f32 %v319_v42, %v1345_v40  ;;  %v320_v46 = vmax.f32 %v1345_v40, %v319_v42  ;;  %v326_v47 = vmax.f32 %v1348_v41, %v325_v43  ;;  %v350_v48 = vadd.f32 %v325_v43, %v1348_v41 }
 0x295   :  { %v345_v49 = vrot.slane %v344_v44, 2  ;;  %v321_v52 = vrot.slane %v320_v46, 2  ;;  %v327_v53 = vrot.slane %v326_v47, 2  ;;  %v351_v54 = vrot.slane %v350_v48, 2 }
 0x296   :  { %v258_v45 = vpop.permute.xlu2 %257 }
 0x297   :  { %v1357_v9 = vmul.f32 %v258_v45, %v1290_v7  ;;  %v1360_v10 = vmul.f32 %v258_v45, %v1292_v8  ;;  %v346_v55 = vadd.f32 %v345_v49, %v344_v44  ;;  %v322_v61 = vmax.f32 %v320_v46, %v321_v52 }
 0x298   :  { %v328_v62 = vmax.f32 %v326_v47, %v327_v53  ;;  %v352_v3 = vadd.f32 %v351_v54, %v350_v48 }
 0x299   :  { %v331_v50 = vrot.slane %v1357_v9, 4  ;;  %v337_v51 = vrot.slane %v1360_v10, 4  ;;  %v347_v63 = vrot.slane %v346_v55, 1  ;;  %v323_v13 = vrot.slane %v322_v61, 1 }
 0x29a   :  { %v329_v14 = vrot.slane %v328_v62, 1  ;;  %v353_v17 = vrot.slane %v352_v3, 1 }
 0x29b   :  { %v332_v56 = vmax.f32 %v1357_v9, %v331_v50  ;;  %v356_v7 = vadd.f32 %v331_v50, %v1357_v9  ;;  %v362_v8 = vadd.f32 %v337_v51, %v1360_v10  ;;  %v338_v57 = vmax.f32 %v1360_v10, %v337_v51 }
 0x29c   :  { %v348_v16 = vadd.f32 %v347_v63, %v346_v55  ;;  %v1385_v31 = vmax.f32 %v322_v61, %v323_v13  ;;  %v1387_v32 = vmax.f32 %v328_v62, %v329_v14  ;;  %v1395_v35 = vadd.f32 %v353_v17, %v352_v3 }
 0x29d   :  { %v333_v58 = vrot.slane %v332_v56, 2  ;;  %v357_v59 = vrot.slane %v356_v7, 2  ;;  %v363_v60 = vrot.slane %v362_v8, 2  ;;  %v339_v6 = vrot.slane %v338_v57, 2 }
 0x29e   :  { %v1397_v36 = vmul.f32 0.125, %v348_v16 }
 0x29f   :  { %v334_v5 = vmax.f32 %v332_v56, %v333_v58  ;;  %v358_v11 = vadd.f32 %v357_v59, %v356_v7  ;;  %v364_v12 = vadd.f32 %v363_v60, %v362_v8  ;;  %v340_v21 = vmax.f32 %v338_v57, %v339_v6 }
 0x2a1   :  { %v335_v20 = vrot.slane %v334_v5, 1  ;;  %v359_v26 = vrot.slane %v358_v11, 1  ;;  %v365_v27 = vrot.slane %v364_v12, 1  ;;  %v341_v42 = vrot.slane %v340_v21, 1 }
 0x2a3   :  { %v1405_v39 = vmax.f32 %v334_v5, %v335_v20  ;;  %v366_v44 = vadd.f32 %v365_v27, %v364_v12 }
 0x2a6   :  { %v252_v28 = vpop.permute.xlu1 %251 }
 0x2a7   :  { %v1390_v33 = vmul.f32 %v252_v28, %v1276_v0  ;;  %v1393_v34 = vmul.f32 %v252_v28, %v1278_v1  ;;  %v239_v23 = vpop.permute.xlu0 %238  ;;  %v360_v1 = vadd.f32 %v359_v26, %v358_v11 }
 0x2a8   :  { %v1400_v37 = vmul.f32 %v239_v23, %v1280_v2  ;;  %v1403_v38 = vmul.f32 %v239_v23, %v1284_v4 }
 0x2a9   :  { %v279_v0 = vrot.slane %v1390_v33, 4  ;;  %v285_v43 = vrot.slane %v1393_v34, 4 }
 0x2aa   :  { %v267_v45 = vrot.slane %v1400_v37, 4  ;;  %v273_v46 = vrot.slane %v1403_v38, 4 }
 0x2ab   :  { %v280_v47 = vmax.f32 %v1390_v33, %v279_v0  ;;  %v286_v2 = vmax.f32 %v1393_v34, %v285_v43  ;;  %v304_v4 = vadd.f32 %v279_v0, %v1390_v33  ;;  %v310_v48 = vadd.f32 %v285_v43, %v1393_v34 }
 0x2ac   :  { %v268_v49 = vmax.f32 %v1400_v37, %v267_v45  ;;  %v274_v50 = vmax.f32 %v1403_v38, %v273_v46  ;;  %v292_v51 = vadd.f32 %v267_v45, %v1400_v37  ;;  %v298_v52 = vadd.f32 %v273_v46, %v1403_v38 }
 0x2ad   :  { %v281_v53 = vrot.slane %v280_v47, 2  ;;  %v287_v54 = vrot.slane %v286_v2, 2  ;;  %v305_v55 = vrot.slane %v304_v4, 2  ;;  %v311_v56 = vrot.slane %v310_v48, 2 }
 0x2ae   :  { %v269_v7 = vrot.slane %v268_v49, 2  ;;  %v275_v8 = vrot.slane %v274_v50, 2  ;;  %v293_v57 = vrot.slane %v292_v51, 2  ;;  %v299_v58 = vrot.slane %v298_v52, 2 }
 0x2af   :  { %v282_v59 = vmax.f32 %v280_v47, %v281_v53  ;;  %v288_v60 = vmax.f32 %v286_v2, %v287_v54  ;;  %v306_v61 = vadd.f32 %v305_v55, %v304_v4  ;;  %v312_v62 = vadd.f32 %v311_v56, %v310_v48 }
 0x2b0   :  { %v270_v63 = vmax.f32 %v268_v49, %v269_v7  ;;  %v276_v3 = vmax.f32 %v274_v50, %v275_v8  ;;  %v294_v5 = vadd.f32 %v293_v57, %v292_v51  ;;  %v300_v6 = vadd.f32 %v299_v58, %v298_v52 }
 0x2b1   :  { %v283_v11 = vrot.slane %v282_v59, 1  ;;  %v289_v12 = vrot.slane %v288_v60, 1  ;;  %v307_v13 = vrot.slane %v306_v61, 1  ;;  %v313_v14 = vrot.slane %v312_v62, 1 }
 0x2b2   :  { %v271_v16 = vrot.slane %v270_v63, 1  ;;  %v277_v17 = vrot.slane %v276_v3, 1  ;;  %v295_v20 = vrot.slane %v294_v5, 1  ;;  %v301_v26 = vrot.slane %v300_v6, 1 }
 0x2b3   :  { %v1419_v27 = vmax.f32 %v282_v59, %v283_v11  ;;  %v1421_v28 = vmax.f32 %v288_v60, %v289_v12  ;;  %v308_v23 = vadd.f32 %v307_v13, %v306_v61  ;;  %v314_v0 = vadd.f32 %v313_v14, %v312_v62 }
 0x2b4   :  { %v1423_v43 = vmax.f32 %v340_v21, %v341_v42  ;;  %v1425_v45 = vmax.f32 %v270_v63, %v271_v16  ;;  %v296_v46 = vadd.f32 %v295_v20, %v294_v5  ;;  %v302_v47 = vadd.f32 %v301_v26, %v300_v6 }
 0x2b5   :  { %v1429_v2 = vmul.f32 0.125, %v360_v1  ;;  %v1431_v4 = vmul.f32 0.125, %v308_v23  ;;  %v1433_v48 = vmul.f32 0.125, %v314_v0  ;;  %v389_v49 = vmul.f32 %v1370_v15, %v1385_v31 }
 0x2b6   :  { %v1437_v50 = vmul.f32 0.125, %v366_v44  ;;  %v1439_v51 = vmax.f32 %v276_v3, %v277_v17  ;;  %v1441_v21 = vmul.f32 0.125, %v296_v46  ;;  %v1443_v42 = vmul.f32 0.125, %v302_v47 }
 0x2b7   :  { %v375_v52 = vmul.f32 %v1377_v22, %v1419_v27  ;;  %v381_v1 = vmul.f32 %v1379_v25, %v1431_v4  ;;  %v376_v53 = vmul.f32 %v1377_v22, %v1421_v28  ;;  %v382_v54 = vmul.f32 %v1379_v25, %v1433_v48 }
 0x2b8   :  { %v391_v44 = vmul.f32 %v1370_v15, %v1405_v39  ;;  %v392_v55 = vmul.f32 %v1370_v15, %v1423_v43  ;;  %v373_v56 = vmul.f32 %v1377_v22, %v1425_v45  ;;  %v379_v7 = vmul.f32 %v1379_v25, %v1441_v21 }
 0x2b9   :  { %v385_v8 = vadd.f32 %v381_v1, %v375_v52  ;;  %v386_v57 = vadd.f32 %v382_v54, %v376_v53  ;;  %v443_v58 = vmul.f32 %v1383_v30, %v1443_v42  ;;  %v442_v59 = vmul.f32 %v1383_v30, %v1441_v21 }
 0x2ba   :  { %v401_v60 = vmul.f32 %v1372_v18, %v1429_v2  ;;  %v402_v61 = vmul.f32 %v1372_v18, %v1437_v50  ;;  %v383_v62 = vadd.f32 %v379_v7, %v373_v56  ;;  %v380_v63 = vmul.f32 %v1379_v25, %v1443_v42 }
 0x2bb   :  { %v395_v3 = vadd.f32 %v391_v44, %v385_v8  ;;  %v396_v5 = vadd.f32 %v392_v55, %v386_v57  ;;  %v437_v6 = vmul.f32 %v1381_v29, %v1439_v51  ;;  %v436_v11 = vmul.f32 %v1381_v29, %v1425_v45 }
 0x2bc   :  { %v393_v12 = vadd.f32 %v389_v49, %v383_v62  ;;  %v399_v13 = vmul.f32 %v1372_v18, %v1397_v36  ;;  %v374_v14 = vmul.f32 %v1377_v22, %v1439_v51  ;;  %v1484_v16 = vstv %s1427_s30  ;;  %s1740_s30 = sld [smem:[#allocation6 + $0xd]] }
 0x2bd   :  { %v405_v25 = vadd.f32 %v401_v60, %v395_v3  ;;  %v406_v17 = vadd.f32 %v402_v61, %v396_v5  ;;  %v447_v20 = vadd.f32 %v443_v58, %v437_v6  ;;  %v446_v26 = vadd.f32 %v442_v59, %v436_v11 }
 0x2be   :  { %v403_v23 = vadd.f32 %v399_v13, %v393_v12  ;;  %v384_v0 = vadd.f32 %v380_v63, %v374_v14  ;;  %v1491_v46 = vmul.f32 0.125, %v1395_v35  ;;  %v453_v22 = vmul.f32 %v1375_v19, %v1387_v32 }
 0x2bf   :  { %409 = vrot.lane.b32.xlu2 %v405_v25, %s1220_s12  ;;  %413 = vrot.lane.b32.xlu0 %v406_v17, %s1220_s12  ;;  %v452_v47 = vmul.f32 %v1375_v19, %v1385_v31  ;;  %v1500_v49 = vstv %s1453_s8  ;;  %v461_v52 = vstv %s1463_s11  ;;  %v390_v35 = vmul.f32 %v1370_v15, %v1387_v32  ;;  %s1223_s8 = smov 127   ;;  %s1767_s11 = sld [smem:[#allocation6 + $0x22]] }
 0x2c0   :  { %407 = vrot.lane.b32.xlu1 %v403_v23, %s1220_s12  ;;  %v508_v1 = vmul.f32 %v1484_v16, %v1431_v4  ;;  %v457_v53 = vadd.f32 %v453_v22, %v447_v20  ;;  %v445_v44 = vmul.f32 %v1383_v30, %v1433_v48  ;;  %v502_v56 = vmul.f32 %v1500_v49, %v1419_v27 }
 0x2c1   :  { %v456_v54 = vadd.f32 %v452_v47, %v446_v26  ;;  %v394_v55 = vadd.f32 %v390_v35, %v384_v0  ;;  %v444_v7 = vmul.f32 %v1383_v30, %v1431_v4  ;;  %v463_v15 = vmul.f32 %v461_v52, %v1491_v46 }
 0x2c2   :  { %v462_v8 = vmul.f32 %v461_v52, %v1397_v36  ;;  %v439_v57 = vmul.f32 %v1381_v29, %v1421_v28  ;;  %v400_v58 = vmul.f32 %v1372_v18, %v1491_v46  ;;  %v512_v59 = vadd.f32 %v508_v1, %v502_v56 }
 0x2c3   :  { %v1527_v60 = vstv %s1486_s0  ;;  %v438_v61 = vmul.f32 %v1381_v29, %v1419_v27  ;;  %v467_v30 = vadd.f32 %v463_v15, %v457_v53  ;;  %v1532_v3 = vstv %s1488_s6  ;;  %s1224_s0 = smov 113   ;;  %s1099_s6 = sld [smem:[#allocation6 + $0x1a]] }
 0x2c4   :  { %v466_v62 = vadd.f32 %v462_v8, %v456_v54  ;;  %v449_v63 = vadd.f32 %v445_v44, %v439_v57  ;;  %v404_v5 = vadd.f32 %v400_v58, %v394_v55  ;;  %v518_v6 = vmul.f32 %v1527_v60, %v1405_v39 }
 0x2c5   :  { %v448_v11 = vadd.f32 %v444_v7, %v438_v61  ;;  %v455_v18 = vmul.f32 %v1375_v19, %v1423_v43  ;;  %v1543_v29 = vstv %s1502_s13  ;;  %v454_v13 = vmul.f32 %v1375_v19, %v1405_v39  ;;  %s1225_s13 = smov 111  }
 0x2c6   :  { %v522_v12 = vadd.f32 %v518_v6, %v512_v59  ;;  %v570_v14 = vmul.f32 %v1532_v3, %v1441_v21  ;;  %v1555_v25 = vstv %s1510_s14  ;;  %v507_v20 = vmul.f32 %v1484_v16, %v1443_v42  ;;  %s1080_s14 = sld [smem:[#allocation6 + $0x1f]] }
 0x2c7   :  { %474 = vrot.lane.b32.xlu0 %v467_v30, %s1217_s10  ;;  %470 = vrot.lane.b32.xlu2 %v466_v62, %s1217_s10  ;;  %v459_v17 = vadd.f32 %v455_v18, %v449_v63  ;;  %v528_v26 = vmul.f32 %v1555_v25, %v1429_v2  ;;  %v458_v23 = vadd.f32 %v454_v13, %v448_v11  ;;  %v1567_v47 = vstv %s1522_s15 }
 0x2c8   :  { %411 = vrot.lane.b32.xlu1 %v404_v5, %s1220_s12  ;;  %v564_v0 = vmul.f32 %v1543_v29, %v1425_v45  ;;  %v506_v19 = vmul.f32 %v1484_v16, %v1441_v21  ;;  %v465_v22 = vmul.f32 %v461_v52, %v1437_v50  ;;  %v501_v35 = vmul.f32 %v1500_v49, %v1439_v51  ;;  %s1100_s12 = sld [smem:[#allocation6 + $0x23]] }
 0x2c9   :  { %v532_v1 = vadd.f32 %v528_v26, %v522_v12  ;;  %v464_v53 = vmul.f32 %v461_v52, %v1429_v2  ;;  %v500_v44 = vmul.f32 %v1500_v49, %v1425_v45  ;;  %v573_v7 = vmul.f32 %v1532_v3, %v1433_v48 }
 0x2ca   :  { %v574_v54 = vadd.f32 %v570_v14, %v564_v0  ;;  %v469_v55 = vadd.f32 %v465_v22, %v459_v17  ;;  %v511_v56 = vadd.f32 %v507_v20, %v501_v35  ;;  %v572_v15 = vmul.f32 %v1532_v3, %v1431_v4 }
 0x2cb   :  { %v468_v8 = vadd.f32 %v464_v53, %v458_v23  ;;  %v580_v52 = vmul.f32 %v1567_v47, %v1385_v31  ;;  %v1583_v57 = vstv %s1536_s16  ;;  %v510_v58 = vadd.f32 %v506_v19, %v500_v44 }
 0x2cc   :  { %v517_v59 = vmul.f32 %v1527_v60, %v1387_v32  ;;  %v567_v61 = vmul.f32 %v1543_v29, %v1421_v28  ;;  %v566_v30 = vmul.f32 %v1543_v29, %v1419_v27  ;;  %v1596_v62 = vstv %s1545_s17 }
 0x2cd   :  { %v584_v63 = vadd.f32 %v580_v52, %v574_v54  ;;  %v516_v5 = vmul.f32 %v1527_v60, %v1385_v31  ;;  %v1604_v6 = vstv %s1552_s1  ;;  %v509_v13 = vmul.f32 %v1484_v16, %v1433_v48 }
 0x2ce   :  { %v521_v11 = vadd.f32 %v517_v59, %v511_v56  ;;  %v577_v18 = vadd.f32 %v573_v7, %v567_v61  ;;  %v576_v12 = vadd.f32 %v572_v15, %v566_v30  ;;  %v590_v14 = vmul.f32 %v1583_v57, %v1397_v36 }
 0x2cf   :  { %536 = vrot.lane.b32.xlu0 %v532_v1, %s1221_s20  ;;  %476 = vrot.lane.b32.xlu2 %v469_v55, %s1217_s10  ;;  %v527_v17 = vmul.f32 %v1555_v25, %v1491_v46  ;;  %v520_v20 = vadd.f32 %v516_v5, %v510_v58  ;;  %v686_v26 = vmul.f32 %v1596_v62, %v1443_v42  ;;  %v1631_v1 = vstv %s1574_s18 }
 0x2d0   :  { %472 = vrot.lane.b32.xlu1 %v468_v8, %s1217_s10  ;;  %v526_v23 = vmul.f32 %v1555_v25, %v1397_v36  ;;  %v583_v0 = vmul.f32 %v1567_v47, %v1423_v43  ;;  %v582_v16 = vmul.f32 %v1567_v47, %v1405_v39  ;;  %v503_v19 = vmul.f32 %v1500_v49, %v1421_v28 }
 0x2d1   :  { %v594_v22 = vadd.f32 %v590_v14, %v584_v63  ;;  %v680_v35 = vmul.f32 %v1604_v6, %v1439_v51  ;;  %v685_v53 = vmul.f32 %v1596_v62, %v1441_v21  ;;  %v531_v54 = vadd.f32 %v527_v17, %v521_v11 }
 0x2d2   :  { %v587_v44 = vadd.f32 %v583_v0, %v577_v18  ;;  %v586_v55 = vadd.f32 %v582_v16, %v576_v12  ;;  %v513_v56 = vadd.f32 %v509_v13, %v503_v19  ;;  %v530_v7 = vadd.f32 %v526_v23, %v520_v20 }
 0x2d3   :  { %v593_v49 = vmul.f32 %v1583_v57, %v1437_v50  ;;  %v690_v15 = vadd.f32 %v686_v26, %v680_v35  ;;  %v679_v8 = vmul.f32 %v1604_v6, %v1425_v45  ;;  %v592_v52 = vmul.f32 %v1583_v57, %v1429_v2 }
 0x2d4   :  { %v519_v58 = vmul.f32 %v1527_v60, %v1423_v43  ;;  %v696_v59 = vmul.f32 %v1631_v1, %v1387_v32  ;;  %v1650_v61 = vstv %s1585_s19  ;;  %v571_v63 = vmul.f32 %v1532_v3, %v1443_v42 }
 0x2d5   :  { %v689_v30 = vadd.f32 %v685_v53, %v679_v8  ;;  %v1660_v5 = vstv %s1598_s21  ;;  %v1663_v60 = vstv %s1606_s22  ;;  %v597_v11 = vadd.f32 %v593_v49, %v587_v44 }
 0x2d6   :  { %v596_v18 = vadd.f32 %v592_v52, %v586_v55  ;;  %v523_v12 = vadd.f32 %v519_v58, %v513_v56  ;;  %v529_v13 = vmul.f32 %v1555_v25, %v1437_v50  ;;  %v700_v14 = vadd.f32 %v696_v59, %v690_v15 }
 0x2d7   :  { %598 = vrot.lane.b32.xlu0 %v594_v22, %s1222_s4  ;;  %538 = vrot.lane.b32.xlu2 %v531_v54, %s1221_s20  ;;  %v695_v17 = vmul.f32 %v1631_v1, %v1385_v31  ;;  %v565_v3 = vmul.f32 %v1543_v29, %v1439_v51  ;;  %v1674_v20 = vstv %s1616_s23  ;;  %v706_v26 = vmul.f32 %v1650_v61, %v1491_v46 }
 0x2d8   :  { %534 = vrot.lane.b32.xlu1 %v530_v7, %s1221_s20  ;;  %v1679_v23 = vstv %s1626_s24  ;;  %v810_v0 = vmul.f32 %v1660_v5, %v1421_v28  ;;  %v816_v25 = vmul.f32 %v1663_v60, %v1433_v48  ;;  %v705_v19 = vmul.f32 %v1650_v61, %v1397_v36 }
 0x2d9   :  { %v699_v16 = vadd.f32 %v695_v17, %v689_v30  ;;  %v575_v22 = vadd.f32 %v571_v63, %v565_v3  ;;  %v581_v29 = vmul.f32 %v1567_v47, %v1387_v32  ;;  %v751_v35 = vmul.f32 %v1674_v20, %v1431_v4 }
 0x2da   :  { %v1691_v53 = vadd.f32 %v816_v25, %v810_v0  ;;  %v809_v54 = vmul.f32 %v1660_v5, %v1419_v27  ;;  %v815_v44 = vmul.f32 %v1663_v60, %v1431_v4  ;;  %v533_v55 = vadd.f32 %v529_v13, %v523_v12 }
 0x2db   :  { %v710_v56 = vadd.f32 %v706_v26, %v700_v14  ;;  %v591_v7 = vmul.f32 %v1583_v57, %v1491_v46  ;;  %v745_v47 = vmul.f32 %v1679_v23, %v1419_v27  ;;  %v746_v15 = vmul.f32 %v1679_v23, %v1421_v28 }
 0x2dc   :  { %v1703_v49 = vadd.f32 %v815_v44, %v809_v54  ;;  %v752_v8 = vmul.f32 %v1674_v20, %v1433_v48  ;;  %v870_v52 = vstv %s1652_s25  ;;  %v709_v57 = vadd.f32 %v705_v19, %v699_v16 }
 0x2dd   :  { %v1712_v58 = vstv %s1639_s3  ;;  %v1715_v59 = vstv %s1657_s26  ;;  %v688_v30 = vmul.f32 %v1596_v62, %v1433_v48  ;;  %v585_v63 = vadd.f32 %v581_v29, %v575_v22 }
 0x2de   :  { %v876_v12 = vstv %s1667_s27  ;;  %v682_v13 = vmul.f32 %v1604_v6, %v1421_v28  ;;  %v687_v14 = vmul.f32 %v1596_v62, %v1431_v4  ;;  %v872_v17 = vmul.f32 %v870_v52, %v1439_v51 }
 0x2df   :  { %604 = vrot.lane.b32.xlu0 %v597_v11, %s1222_s4  ;;  %600 = vrot.lane.b32.xlu2 %v596_v18, %s1222_s4  ;;  %v755_v11 = vadd.f32 %v751_v35, %v745_v47  ;;  %v1719_v18 = vadd.f32 %v752_v8, %v746_v15  ;;  %v878_v3 = vmul.f32 %v876_v12, %v1443_v42 }
 0x2e0   :  { %540 = vrot.lane.b32.xlu1 %v533_v55, %s1221_s20  ;;  %v761_v26 = vmul.f32 %v1712_v58, %v1405_v39  ;;  %v771_v0 = vmul.f32 %v1715_v59, %v1429_v2  ;;  %v698_v25 = vmul.f32 %v1631_v1, %v1423_v43  ;;  %v681_v16 = vmul.f32 %v1604_v6, %v1419_v27 }
 0x2e1   :  { %v692_v62 = vadd.f32 %v688_v30, %v682_v13  ;;  %v1742_v19 = vadd.f32 %v878_v3, %v872_v17  ;;  %v871_v22 = vmul.f32 %v870_v52, %v1425_v45  ;;  %v877_v29 = vmul.f32 %v876_v12, %v1441_v21 }
 0x2e2   :  { %v595_v35 = vadd.f32 %v591_v7, %v585_v63  ;;  %v708_v54 = vmul.f32 %v1650_v61, %v1437_v50  ;;  %v808_v44 = vmul.f32 %v1660_v5, %v1439_v51  ;;  %v814_v55 = vmul.f32 %v1663_v60, %v1443_v42 }
 0x2e3   :  { %v765_v6 = vadd.f32 %v761_v26, %v755_v11  ;;  %v691_v47 = vadd.f32 %v687_v14, %v681_v16  ;;  %v697_v15 = vmul.f32 %v1631_v1, %v1405_v39  ;;  %v1754_v8 = vadd.f32 %v877_v29, %v871_v22 }
 0x2e4   :  { %v1758_v7 = vadd.f32 %v814_v55, %v808_v44  ;;  %v874_v30 = vmul.f32 %v870_v52, %v1421_v28  ;;  %v880_v63 = vmul.f32 %v876_v12, %v1433_v48  ;;  %v702_v11 = vadd.f32 %v698_v25, %v692_v62 }
 0x2e5   :  { %v707_v1 = vmul.f32 %v1650_v61, %v1429_v2  ;;  %v813_v13 = vmul.f32 %v1663_v60, %v1441_v21  ;;  %v873_v14 = vmul.f32 %v870_v52, %v1419_v27  ;;  %v879_v17 = vmul.f32 %v876_v12, %v1431_v4 }
 0x2e6   :  { %v627_v3 = vstv %s1722_s28  ;;  %v701_v26 = vadd.f32 %v697_v15, %v691_v47  ;;  %v807_v25 = vmul.f32 %v1660_v5, %v1425_v45  ;;  %v1779_v61 = vstv %s1728_s29 }
 0x2e7   :  { %717 = vrot.lane.b32.xlu0 %v710_v56, %s1223_s8  ;;  %713 = vrot.lane.b32.xlu2 %v709_v57, %s1223_s8  ;;  %v750_v56 = vmul.f32 %v1674_v20, %v1443_v42  ;;  %v1771_v57 = vadd.f32 %v880_v63, %v874_v30  ;;  %v749_v60 = vmul.f32 %v1674_v20, %v1441_v21  ;;  %v633_v52 = vstv %s1740_s30  ;;  %s2039_s30 = sld [smem:[#allocation6 + $0x24]] }
 0x2e8   :  { %602 = vrot.lane.b32.xlu1 %v595_v35, %s1222_s4  ;;  %v744_v16 = vmul.f32 %v1679_v23, %v1439_v51  ;;  %v743_v62 = vmul.f32 %v1679_v23, %v1425_v45  ;;  %v1787_v22 = vadd.f32 %v879_v17, %v873_v14  ;;  %v628_v12 = vmul.f32 %v627_v3, %v1425_v45 }
 0x2e9   :  { %v629_v29 = vmul.f32 %v627_v3, %v1439_v51  ;;  %v634_v5 = vmul.f32 %v633_v52, %v1441_v21  ;;  %v635_v35 = vmul.f32 %v633_v52, %v1443_v42  ;;  %v775_v44 = vadd.f32 %v771_v0, %v765_v6 }
 0x2ea   :  { %v712_v20 = vadd.f32 %v708_v54, %v702_v11  ;;  %v817_v55 = vadd.f32 %v813_v13, %v807_v25  ;;  %v754_v47 = vadd.f32 %v750_v56, %v744_v16  ;;  %v711_v15 = vadd.f32 %v707_v1, %v701_v26 }
 0x2eb   :  { %v753_v30 = vadd.f32 %v749_v60, %v743_v62  ;;  %v1794_v63 = vadd.f32 %v634_v5, %v628_v12  ;;  %v1796_v23 = vadd.f32 %v635_v35, %v629_v29  ;;  %v823_v45 = vmul.f32 %v1779_v61, %v1385_v31 }
 0x2ec   :  { %v760_v51 = vmul.f32 %v1712_v58, %v1387_v32  ;;  %v832_v21 = vstv %s1767_s11  ;;  %v759_v42 = vmul.f32 %v1712_v58, %v1385_v31  ;;  %v630_v0 = vmul.f32 %v627_v3, %v1419_v27 }
 0x2ed   :  { %v636_v54 = vmul.f32 %v633_v52, %v1431_v4  ;;  %v827_v6 = vadd.f32 %v823_v45, %v817_v55  ;;  %v631_v1 = vmul.f32 %v627_v3, %v1421_v28  ;;  %v637_v13 = vmul.f32 %v633_v52, %v1433_v48 }
 0x2ee   :  { %v764_v11 = vadd.f32 %v760_v51, %v754_v47  ;;  %v763_v56 = vadd.f32 %v759_v42, %v753_v30  ;;  %v833_v17 = vmul.f32 %v832_v21, %v1397_v36  ;;  %v770_v26 = vmul.f32 %v1715_v59, %v1491_v46 }
 0x2ef   :  { %779 = vrot.lane.b32.xlu0 %v775_v44, %s1224_s0  ;;  %719 = vrot.lane.b32.xlu2 %v712_v20, %s1223_s8  ;;  %v1812_v14 = vadd.f32 %v636_v54, %v630_v0  ;;  %v1817_v25 = vadd.f32 %v637_v13, %v631_v1  ;;  %v769_v27 = vmul.f32 %v1715_v59, %v1397_v36  ;;  %v886_v44 = vstv %s1099_s6  ;;  %s1041_s6 = sshll.u32 %s2106_s7, 4  ;;  %s1042_s6 = int_to_ptr.hbm [resolvable:$true] %s1041_s6 }
 0x2f0   :  { %715 = vrot.lane.b32.xlu1 %v711_v15, %s1223_s8  ;;  %v837_v4 = vadd.f32 %v833_v17, %v827_v6  ;;  %v774_v60 = vadd.f32 %v770_v26, %v764_v11  ;;  %v826_v28 = vmul.f32 %v1779_v61, %v1423_v43  ;;  %v825_v48 = vmul.f32 %v1779_v61, %v1405_v39 }
 0x2f1   :  { %v773_v16 = vadd.f32 %v769_v27, %v763_v56  ;;  %v762_v3 = vmul.f32 %v1712_v58, %v1423_v43  ;;  %v836_v29 = vmul.f32 %v832_v21, %v1437_v50  ;;  %v835_v5 = vmul.f32 %v832_v21, %v1429_v2 }
 0x2f2   :  { %v830_v62 = vadd.f32 %v826_v28, %v1691_v53  ;;  %v829_v52 = vadd.f32 %v825_v48, %v1703_v49  ;;  %v772_v35 = vmul.f32 %v1715_v59, %v1437_v50  ;;  %v888_v53 = vmul.f32 %v886_v44, %v1387_v32 }
 0x2f3   :  { %v766_v12 = vadd.f32 %v762_v3, %v1719_v18  ;;  %v887_v49 = vmul.f32 %v886_v44, %v1385_v31  ;;  %v896_v58 = vstv %s1100_s12  ;;  %v824_v18 = vmul.f32 %v1779_v61, %v1387_v32 }
 0x2f4   :  { %v840_v20 = vadd.f32 %v836_v29, %v830_v62  ;;  %v839_v55 = vadd.f32 %v835_v5, %v829_v52  ;;  %v892_v59 = vadd.f32 %v888_v53, %v1742_v19  ;;  %v898_v45 = vmul.f32 %v896_v58, %v1491_v46  ;;  %v1879_v29 = vld [vmem:[%s2104_s5] ss:$8 sm:$0x3] }
 0x2f5   :  { %v776_v47 = vadd.f32 %v772_v35, %v766_v12  ;;  %v891_v15 = vadd.f32 %v887_v49, %v1754_v8  ;;  %v828_v30 = vadd.f32 %v824_v18, %v1758_v7  ;;  %v897_v51 = vmul.f32 %v896_v58, %v1397_v36 }
 0x2f6   :  { %v834_v42 = vmul.f32 %v832_v21, %v1491_v46  ;;  %v902_v0 = vadd.f32 %v898_v45, %v892_v59  ;;  %v890_v61 = vmul.f32 %v886_v44, %v1423_v43  ;;  %v889_v19 = vmul.f32 %v886_v44, %v1405_v39  ;;  %v1888_v44 = vld [vmem:[%s2104_s5 + $0x1] ss:$8 sm:$0x3]  ;;  %v1920_v45 = vld [vmem:[%s2104_s5 + $0x3] ss:$8 sm:$0x3] }
 0x2f7   :  { %841 = vrot.lane.b32.xlu0 %v837_v4, %s1219_s2  ;;  %781 = vrot.lane.b32.xlu2 %v774_v60, %s1224_s0  ;;  %v901_v54 = vadd.f32 %v897_v51, %v891_v15  ;;  %v900_v11 = vmul.f32 %v896_v58, %v1437_v50  ;;  %v899_v21 = vmul.f32 %v896_v58, %v1429_v2  ;;  %v423_v18 = vperm.slane %v1879_v29, 1 }
 0x2f8   :  { %777 = vrot.lane.b32.xlu1 %v773_v16, %s1224_s0  ;;  %v838_v6 = vadd.f32 %v834_v42, %v828_v30  ;;  %v894_v8 = vadd.f32 %v890_v61, %v1771_v57  ;;  %v893_v7 = vadd.f32 %v889_v19, %v1787_v22  ;;  %v486_v59 = vperm.slane %v1888_v44, 0 }
 0x2f9   :  { %v487_v15 = vperm.slane %v1888_v44, 1 }
 0x2fa   :  { %v904_v1 = vadd.f32 %v900_v11, %v894_v8  ;;  %v903_v13 = vadd.f32 %v899_v21, %v893_v7 }
 0x2ff   :  { %847 = vrot.lane.b32.xlu0 %v840_v20, %s1219_s2  ;;  %843 = vrot.lane.b32.xlu2 %v839_v55, %s1219_s2  ;;  %v1893_v55 = vstv %s1080_s14 }
 0x300   :  { %783 = vrot.lane.b32.xlu1 %v776_v47, %s1224_s0  ;;  %v1898_v47 = vld [vmem:[%s2104_s5 + $0x4] ss:$8 sm:$0x3]  ;;  %v656_v30 = vmul.f32 %v1893_v55, %v1429_v2  ;;  %v657_v42 = vmul.f32 %v1893_v55, %v1437_v50  ;;  %v614_v50 = vperm.slane %v1920_v45, 0 }
 0x301   :  { %v666_v51 = vperm.slane %v1898_v47, 1 }
 0x307   :  { %909 = vrot.lane.b32.xlu0 %v902_v0, %s1225_s13  ;;  %905 = vrot.lane.b32.xlu2 %v901_v54, %s1225_s13 }
 0x308   :  { %845 = vrot.lane.b32.xlu1 %v838_v6, %s1219_s2  ;;  %s1079_s2 = sld [smem:[#allocation6 + $0x16]] }
 0x30e   :  { %v1874_v12 = vstv %s1079_s2 }
 0x30f   :  { %911 = vrot.lane.b32.xlu2 %v904_v1, %s1225_s13  ;;  %v646_v35 = vmul.f32 %v1874_v12, %v1405_v39  ;;  %v647_v20 = vmul.f32 %v1874_v12, %v1423_v43  ;;  %v422_v39 = vperm.slane %v1879_v29, 0 }
 0x310   :  { %907 = vrot.lane.b32.xlu1 %v903_v13, %s1225_s13  ;;  %v615_v13 = vperm.slane %v1920_v45, 1 }
 0x311   :  { %v650_v53 = vadd.f32 %v646_v35, %v1812_v14  ;;  %v651_v43 = vadd.f32 %v647_v20, %v1817_v25  ;;  %v1913_v14 = vld [vmem:[%s2104_s5 + $0x2] ss:$8 sm:$0x3]  ;;  %v665_v25 = vperm.slane %v1898_v47, 0 }
 0x312   :  { %v550_v2 = vperm.slane %v1913_v14, 0  ;;  %v551_v19 = vperm.slane %v1913_v14, 1 }
 0x313   :  { %v660_v61 = vadd.f32 %v656_v30, %v650_v53  ;;  %v661_v7 = vadd.f32 %v657_v42, %v651_v43 }
 0x315   :  { %v671_v14 = vmul.f32 %v665_v25, %v660_v61 }
 0x319   :  { %v410_v56 = vpop.permute.xlu2 %409 }
 0x321   :  { %v1857_v17 = vpop.permute.xlu2 %470 }
 0x329   :  { %v477_v27 = vpop.permute.xlu2 %476 }
 0x331   :  { %v414_v26 = vpop.permute.xlu0 %413  ;;  %v1870_v28 = vpop.permute.xlu2 %538 }
 0x332   :  { %v1860_v4 = vpop.permute.xlu1 %407  ;;  %v417_v57 = vsel %vm415_vm14, %v410_v56, %v414_v26  ;;  %v419_v22 = vsel %vm415_vm14, %v414_v26, %v410_v56 }
 0x333   :  { %v428_v11 = vmul.f32 %v422_v39, %v419_v22  ;;  %v429_v21 = vmul.f32 %v423_v18, %v417_v57 }
 0x339   :  { %v1866_v60 = vpop.permute.xlu0 %474  ;;  %v601_v62 = vpop.permute.xlu2 %600 }
 0x33a   :  { %v1868_v16 = vpop.permute.xlu1 %411 }
 0x33b   :  { %v416_v61 = vsel %vm415_vm14, %v1860_v4, %v1868_v16 }
 0x341   :  { %v537_v48 = vpop.permute.xlu0 %536  ;;  %v1926_v0 = vpop.permute.xlu2 %713 }
 0x342   :  { %v473_v3 = vpop.permute.xlu1 %472 }
 0x343   :  { %v480_v49 = vsel %vm478_vm15, %v473_v3, %v477_v27  ;;  %v482_v58 = vsel %vm478_vm15, %v477_v27, %v473_v3 }
 0x344   :  { %v492_v54 = vmul.f32 %v486_v59, %v482_v58  ;;  %v493_v6 = vmul.f32 %v487_v15, %v480_v49 }
 0x346   :  { %v496_v29 = vadd.f32 %v492_v54, %v428_v11  ;;  %v497_v22 = vadd.f32 %v493_v6, %v429_v21  ;;  %v479_v21 = vsel %vm478_vm15, %v1857_v17, %v1866_v60 }
 0x349   :  { %v1872_v52 = vpop.permute.xlu0 %598  ;;  %v1946_v45 = vpop.permute.xlu2 %719 }
 0x34a   :  { %v1881_v5 = vpop.permute.xlu1 %534 }
 0x351   :  { %v605_v8 = vpop.permute.xlu0 %604  ;;  %v782_v11 = vpop.permute.xlu2 %781 }
 0x352   :  { %v541_v1 = vpop.permute.xlu1 %540  ;;  %v608_v27 = vsel %vm606_vm0, %v601_v62, %v605_v8  ;;  %v610_v3 = vsel %vm606_vm0, %v605_v8, %v601_v62 }
 0x353   :  { %v544_v56 = vsel %vm542_vm1, %v537_v48, %v541_v1  ;;  %v546_v26 = vsel %vm542_vm1, %v541_v1, %v537_v48  ;;  %v620_v53 = vmul.f32 %v614_v50, %v610_v3  ;;  %v621_v49 = vmul.f32 %v615_v13, %v608_v27 }
 0x354   :  { %v556_v57 = vmul.f32 %v550_v2, %v546_v26  ;;  %v557_v35 = vmul.f32 %v551_v19, %v544_v56  ;;  %v672_v48 = vmul.f32 %v666_v51, %v661_v7  ;;  %v418_v7 = vsel %vm415_vm14, %v1868_v16, %v1860_v4 }
 0x355   :  { %v481_v1 = vsel %vm478_vm15, %v1866_v60, %v1857_v17  ;;  %v543_v56 = vsel %vm542_vm1, %v1881_v5, %v1870_v28  ;;  %v545_v4 = vsel %vm542_vm1, %v1870_v28, %v1881_v5  ;;  %v644_v16 = vmul.f32 %v1874_v12, %v1385_v31 }
 0x356   :  { %v560_v44 = vadd.f32 %v556_v57, %v496_v29  ;;  %v561_v20 = vadd.f32 %v557_v35, %v497_v22  ;;  %v645_v26 = vmul.f32 %v1874_v12, %v1387_v32  ;;  %v426_v3 = vmul.f32 %v422_v39, %v418_v7 }
 0x357   :  { %v427_v17 = vmul.f32 %v423_v18, %v416_v61  ;;  %v490_v60 = vmul.f32 %v486_v59, %v481_v1  ;;  %v491_v29 = vmul.f32 %v487_v15, %v479_v21  ;;  %v648_v31 = vadd.f32 %v644_v16, %v1794_v63 }
 0x358   :  { %v624_v58 = vadd.f32 %v620_v53, %v560_v44  ;;  %v625_v43 = vadd.f32 %v621_v49, %v561_v20  ;;  %v649_v5 = vadd.f32 %v645_v26, %v1796_v23  ;;  %v554_v32 = vmul.f32 %v550_v2, %v545_v4  ;;  %v1086_v23 = vld [vmem:[%s2104_s5 + $0x5] ss:$8 sm:$0x3] }
 0x359   :  { %v718_v30 = vpop.permute.xlu0 %717  ;;  %v555_v12 = vmul.f32 %v551_v19, %v543_v56  ;;  %v654_v39 = vmul.f32 %v1893_v55, %v1397_v36  ;;  %v655_v18 = vmul.f32 %v1893_v55, %v1491_v46  ;;  %v494_v59 = vadd.f32 %v490_v60, %v426_v3  ;;  %v1996_v35 = vpop.permute.xlu2 %843  ;;  %v1091_v36 = vld [vmem:[%s2104_s5 + $0x6] ss:$8 sm:$0x3] }
 0x35a   :  { %v603_v62 = vpop.permute.xlu1 %602  ;;  %v1948_v42 = vadd.f32 %v671_v14, %v624_v58  ;;  %v1950_v54 = vadd.f32 %v672_v48, %v625_v43  ;;  %v495_v15 = vadd.f32 %v491_v29, %v427_v17  ;;  %v729_v43 = vperm.slane %v1086_v23, 0 }
 0x35b   :  { %v607_v57 = vsel %vm606_vm0, %v1872_v52, %v603_v62  ;;  %v609_v28 = vsel %vm606_vm0, %v603_v62, %v1872_v52  ;;  %v658_v53 = vadd.f32 %v654_v39, %v648_v31  ;;  %v659_v52 = vadd.f32 %v655_v18, %v649_v5 }
 0x35c   :  { %v618_v44 = vmul.f32 %v614_v50, %v609_v28  ;;  %v619_v20 = vmul.f32 %v615_v13, %v607_v57  ;;  %v558_v49 = vadd.f32 %v554_v32, %v494_v59  ;;  %v559_v63 = vadd.f32 %v555_v12, %v495_v15  ;;  %v1096_v50 = vld [vmem:[%s2104_s5 + $0x7] ss:$8 sm:$0x3] }
 0x35d   :  { %v669_v13 = vmul.f32 %v665_v25, %v658_v53  ;;  %v670_v58 = vmul.f32 %v666_v51, %v659_v52  ;;  %v730_v14 = vperm.slane %v1086_v23, 1  ;;  %v722_v48 = vsel %vm721_vm2, %v1926_v0, %v718_v30 }
 0x35e   :  { %v622_v55 = vadd.f32 %v618_v44, %v558_v49  ;;  %v623_v2 = vadd.f32 %v619_v20, %v559_v63  ;;  %v793_v62 = vperm.slane %v1091_v36, 0  ;;  %v794_v61 = vperm.slane %v1091_v36, 1 }
 0x35f   :  { %v724_v7 = vsel %vm721_vm2, %v718_v30, %v1926_v0  ;;  %v857_v51 = vperm.slane %v1096_v50, 0  ;;  %v1101_v0 = vld [vmem:[%s2104_s5 + $0x10] ss:$8 sm:$0x3]  ;;  %v733_v30 = vmul.f32 %v729_v43, %v722_v48  ;;  %v858_v26 = vperm.slane %v1096_v50, 1  ;;  %s1226_s5 = smov [#allocation7]  }
 0x360   :  { %v673_v21 = vadd.f32 %v669_v13, %v622_v55  ;;  %v674_v1 = vadd.f32 %v670_v58, %v623_v2  ;;  %v734_v3 = vmul.f32 %v730_v14, %v724_v7  ;;  %v922_v57 = vperm.slane %v1101_v0, 1  ;;  %s1039_s8 = sshll.u32 %s1226_s5, 4  ;;  %s1040_s8 = int_to_ptr.vmem [resolvable:$true] %s1039_s8 }
 0x361   :  { %v1952_v6 = vpop.permute.xlu0 %779  ;;  %v906_v17 = vpop.permute.xlu2 %905  ;;  %v934_v58 = vstv %s2039_s30 }
 0x362   :  { %v716_v8 = vpop.permute.xlu1 %715  ;;  %v737_v31 = vadd.f32 %v733_v30, %v673_v21  ;;  %v738_v5 = vadd.f32 %v734_v3, %v674_v1 }
 0x363   :  { %v723_v56 = vsel %vm721_vm2, %v716_v8, %v1946_v45  ;;  %v725_v4 = vsel %vm721_vm2, %v1946_v45, %v716_v8 }
 0x364   :  { %v735_v8 = vmul.f32 %v729_v43, %v723_v56  ;;  %v736_v29 = vmul.f32 %v730_v14, %v725_v4 }
 0x366   :  { %v739_v49 = vadd.f32 %v735_v8, %v1948_v42  ;;  %v740_v63 = vadd.f32 %v736_v29, %v1950_v54 }
 0x369   :  { %v1982_v27 = vpop.permute.xlu0 %841  ;;  %v912_v54 = vpop.permute.xlu2 %911 }
 0x36a   :  { %v778_v22 = vpop.permute.xlu1 %777 }
 0x36b   :  { %v786_v25 = vsel %vm785_vm3, %v778_v22, %v782_v11  ;;  %v788_v47 = vsel %vm785_vm3, %v782_v11, %v778_v22  ;;  %v921_v22 = vperm.slane %v1101_v0, 0 }
 0x36c   :  { %v797_v60 = vmul.f32 %v793_v62, %v786_v25  ;;  %v798_v45 = vmul.f32 %v794_v61, %v788_v47 }
 0x36e   :  { %v801_v44 = vadd.f32 %v797_v60, %v737_v31  ;;  %v802_v20 = vadd.f32 %v798_v45, %v738_v5 }
 0x371   :  { %v848_v46 = vpop.permute.xlu0 %847 }
 0x372   :  { %v784_v19 = vpop.permute.xlu1 %783  ;;  %v851_v23 = vsel %vm849_vm4, %v1996_v35, %v848_v46 }
 0x373   :  { %v787_v11 = vsel %vm785_vm3, %v1952_v6, %v784_v19  ;;  %v789_v16 = vsel %vm785_vm3, %v784_v19, %v1952_v6  ;;  %v863_v42 = vmul.f32 %v857_v51, %v851_v23 }
 0x374   :  { %v799_v32 = vmul.f32 %v793_v62, %v787_v11  ;;  %v800_v12 = vmul.f32 %v794_v61, %v789_v16 }
 0x376   :  { %v803_v50 = vadd.f32 %v799_v32, %v739_v49  ;;  %v804_v13 = vadd.f32 %v800_v12, %v740_v63 }
 0x378   :  { %v867_v25 = vadd.f32 %v863_v42, %v803_v50 }
 0x379   :  { %v910_v28 = vpop.permute.xlu0 %909 }
 0x37a   :  { %v846_v39 = vpop.permute.xlu1 %845  ;;  %v914_v59 = vsel %vm913_vm5, %v906_v17, %v910_v28  ;;  %v916_v15 = vsel %vm913_vm5, %v910_v28, %v906_v17 }
 0x37b   :  { %v850_v6 = vsel %vm849_vm4, %v1982_v27, %v846_v39  ;;  %v852_v18 = vsel %vm849_vm4, %v846_v39, %v1982_v27  ;;  %v853_v27 = vsel %vm849_vm4, %v848_v46, %v1996_v35  ;;  %v925_v2 = vmul.f32 %v921_v22, %v914_v59 }
 0x37c   :  { %v861_v53 = vmul.f32 %v857_v51, %v850_v6  ;;  %v862_v52 = vmul.f32 %v858_v26, %v852_v18  ;;  %v926_v19 = vmul.f32 %v922_v57, %v916_v15  ;;  %v864_v48 = vmul.f32 %v858_v26, %v853_v27 }
 0x37e   :  { %v865_v36 = vadd.f32 %v861_v53, %v801_v44  ;;  %v866_v55 = vadd.f32 %v862_v52, %v802_v20  ;;  %v868_v47 = vadd.f32 %v864_v48, %v804_v13 }
 0x380   :  { %v929_v43 = vadd.f32 %v925_v2, %v865_v36  ;;  %v930_v14 = vadd.f32 %v926_v19, %v866_v55 }
 0x382   :  { %v935_v62 = vadd.f32 %v934_v58, %v929_v43  ;;  %v936_v61 = vadd.f32 %v934_v58, %v930_v14  ;;  %v908_v7 = vpop.permute.xlu1 %907 }
 0x383   :  { %v915_v35 = vsel %vm913_vm5, %v908_v7, %v912_v54  ;;  %v917_v46 = vsel %vm913_vm5, %v912_v54, %v908_v7 }
 0x384   :  { %v1103_v21 = vmul.f32 -1.442695, %v935_v62  ;;  %v1104_v1 = vmul.f32 -1.442695, %v936_v61  ;;  %v927_v56 = vmul.f32 %v921_v22, %v915_v35  ;;  %v928_v4 = vmul.f32 %v922_v57, %v917_v46 }
 0x386   :  { %1133 = vpow2.f32 %v1103_v21  ;;  %v931_v0 = vadd.f32 %v927_v56, %v867_v25  ;;  %v932_v51 = vadd.f32 %v928_v4, %v868_v47 }
 0x387   :  { %1135 = vpow2.f32 %v1104_v1 }
 0x388   :  { %v937_v30 = vadd.f32 %v934_v58, %v931_v0  ;;  %v938_v11 = vadd.f32 %v934_v58, %v932_v51 }
 0x38a   :  { %v1105_v16 = vmul.f32 -1.442695, %v937_v30  ;;  %v1106_v26 = vmul.f32 -1.442695, %v938_v11 }
 0x38c   :  { %v1134_v3 = vpop.eup %1133  ;;  %1137 = vpow2.f32 %v1105_v16 }
 0x38d   :  { %v1136_v17 = vpop.eup %1135  ;;  %v951_v60 = vadd.f32 1.0, %v1134_v3  ;;  %1139 = vpow2.f32 %v1106_v26 }
 0x38e   :  { %v952_v45 = vadd.f32 1.0, %v1136_v17 }
 0x38f   :  { %1141 = vrcp.f32 %v951_v60  ;;  %v964_v5 = vand.u32 2147483647, %v951_v60  ;;  %v966_v39 = vand.u32 2147483648, %v951_v60  ;;  %vm960_vm6 = vweird.f32 %v951_v60 }
 0x390   :  { %1143 = vrcp.f32 %v952_v45  ;;  %v979_v6 = vand.u32 2147483647, %v952_v45  ;;  %v981_v59 = vand.u32 2147483648, %v952_v45  ;;  %vm975_vm9 = vweird.f32 %v952_v45 }
 0x391   :  { %vm2068_vm8 = vcmp.eq.f32.partialorder %v964_v5, 8.507059e+37  ;;  %v967_v63 = vor.u32 1.1754944e-38, %v966_v39 }
 0x392   :  { %v1138_v24 = vpop.eup %1137  ;;  %vm2072_vm11 = vcmp.eq.f32.partialorder %v979_v6, 8.507059e+37  ;;  %v982_v55 = vor.u32 1.1754944e-38, %v981_v59 }
 0x393   :  { %v1140_v8 = vpop.eup %1139  ;;  %v953_v29 = vadd.f32 1.0, %v1138_v24 }
 0x394   :  { %v2065_v22 = vadd.f32 1.0, %v1140_v8 }
 0x395   :  { %v1142_v57 = vpop.eup %1141  ;;  %1145 = vrcp.f32 %v953_v29  ;;  %vm990_vm13 = vweird.f32 %v953_v29  ;;  %v994_v13 = vand.u32 2147483647, %v953_v29  ;;  %v996_v58 = vand.u32 2147483648, %v953_v29 }
 0x396   :  { %v1144_v28 = vpop.eup %1143  ;;  %v956_v31 = vmul.f32 %v1142_v57, %v951_v60  ;;  %1147 = vrcp.f32 %v2065_v22  ;;  %vm961_vm7 = vweird.f32 %v1142_v57  ;;  %v1011_v48 = vand.u32 2147483648, %v2065_v22 }
 0x397   :  { %v971_v32 = vmul.f32 %v1144_v28, %v952_v45  ;;  %vm976_vm10 = vweird.f32 %v1144_v28  ;;  %vm962_vm12 = vmor %vm960_vm6, %vm961_vm7  ;;  %v1009_v47 = vand.u32 2147483647, %v2065_v22  ;;  %vm1005_vm1 = vweird.f32 %v2065_v22 }
 0x398   :  { %v957_v12 = vsub.f32 1.0, %v956_v31  ;;  %vm977_vm14 = vmor %vm975_vm9, %vm976_vm10  ;;  %v997_v1 = vor.u32 1.1754944e-38, %v996_v58  ;;  %vm995_vm3 = vcmp.eq.f32.partialorder %v994_v13, 8.507059e+37  ;;  %v1012_v30 = vor.u32 1.1754944e-38, %v1011_v48 }
 0x399   :  { %v972_v18 = vsub.f32 1.0, %v971_v32  ;;  %vm1010_vm5 = vcmp.eq.f32.partialorder %v1009_v47, 8.507059e+37 }
 0x39a   :  { %v958_v15 = vmul.f32 %v1142_v57, %v957_v12 }
 0x39b   :  { %v1146_v44 = vpop.eup %1145  ;;  %v973_v53 = vmul.f32 %v1144_v28, %v972_v18 }
 0x39c   :  { %v1148_v52 = vpop.eup %1147  ;;  %v959_v49 = vadd.f32 %v1142_v57, %v958_v15  ;;  %v986_v27 = vmul.f32 %v1146_v44, %v953_v29  ;;  %vm991_vm15 = vweird.f32 %v1146_v44 }
 0x39d   :  { %v974_v36 = vadd.f32 %v1144_v28, %v973_v53  ;;  %v1001_v2 = vmul.f32 %v1148_v52, %v2065_v22  ;;  %vm1006_vm0 = vweird.f32 %v1148_v52  ;;  %vm992_vm2 = vmor %vm990_vm13, %vm991_vm15 }
 0x39e   :  { %v963_v19 = vsel %vm962_vm12, %v1142_v57, %v959_v49  ;;  %v987_v50 = vsub.f32 1.0, %v986_v27  ;;  %vm1007_vm4 = vmor %vm1005_vm1, %vm1006_vm0 }
 0x39f   :  { %v968_v43 = vsel %vm2068_vm8, %v967_v63, %v963_v19  ;;  %v978_v14 = vsel %vm977_vm14, %v1144_v28, %v974_v36  ;;  %v1002_v42 = vsub.f32 1.0, %v1001_v2 }
 0x3a0   :  { %v983_v54 = vsel %vm2072_vm11, %v982_v55, %v978_v14  ;;  %v1015_v62 = vperm.slane %v968_v43, 0  ;;  %v988_v61 = vmul.f32 %v1146_v44, %v987_v50 }
 0x3a1   :  { %v1016_v7 = vperm.slane %v983_v54, 0  ;;  %v1003_v25 = vmul.f32 %v1148_v52, %v1002_v42 }
 0x3a2   :  { %v989_v35 = vadd.f32 %v1146_v44, %v988_v61  ;;  %v1019_v46 = vmul.f32 %v1015_v62, %v1400_v37  ;;  %v1021_v21 = vmul.f32 %v1015_v62, %v1345_v40 }
 0x3a3   :  { %v1004_v56 = vadd.f32 %v1148_v52, %v1003_v25  ;;  %v1020_v4 = vmul.f32 %v1016_v7, %v1403_v38  ;;  %v1022_v0 = vmul.f32 %v1016_v7, %v1348_v41 }
 0x3a4   :  { %v993_v51 = vsel %vm992_vm2, %v1146_v44, %v989_v35  ;;  %1027 = vst [vmem:[#allocation7] sm:$0xff] %v1019_v46 }
 0x3a5   :  { %v998_v11 = vsel %vm995_vm3, %v997_v1, %v993_v51  ;;  %v1008_v16 = vsel %vm1007_vm4, %v1148_v52, %v1004_v56  ;;  %1028 = vst [vmem:[#allocation7 + $0x8] sm:$0xff] %v1020_v4 }
 0x3a6   :  { %v1013_v37 = vsel %vm1010_vm5, %v1012_v30, %v1008_v16  ;;  %v1017_v26 = vperm.slane %v998_v11, 0  ;;  %1029 = vst [vmem:[#allocation7 + $0x10] sm:$0xff] %v1021_v21 }
 0x3a7   :  { %v1018_v40 = vperm.slane %v1013_v37, 0  ;;  %1030 = vst [vmem:[#allocation7 + $0x18] sm:$0xff] %v1022_v0 }
 0x3a8   :  { %v1023_v3 = vmul.f32 %v1017_v26, %v1390_v33  ;;  %v1025_v38 = vmul.f32 %v1017_v26, %v1357_v9 }
 0x3a9   :  { %v1024_v41 = vmul.f32 %v1018_v40, %v1393_v34  ;;  %v1026_v17 = vmul.f32 %v1018_v40, %v1360_v10 }
 0x3aa   :  { %1031 = vst [vmem:[#allocation7 + $0x20] sm:$0xff] %v1023_v3 }
 0x3ab   :  { %1032 = vst [vmem:[#allocation7 + $0x28] sm:$0xff] %v1024_v41 }
 0x3ac   :  { %1033 = vst [vmem:[#allocation7 + $0x30] sm:$0xff] %v1025_v38 }
 0x3ad   :  { %1034 = vst [vmem:[#allocation7 + $0x38] sm:$0xff] %v1026_v17 }
 0x3ae   :  { %1047 = dma.vmem_to_hbm [thread:$0]  %s1040_s8, 1024, %s1042_s6, [#allocation4], %s1216_s9, %s1216_s9, %s1217_s10  }
 0x3af   :  { %1213 = dma.done.wait [#allocation4], 1024  }
 0x3b0   :  { %1214 = vsyncadd [#allocation4], 4294966272 }
 0x3b1   :  { %1052 = vsyncpa [#allocation3], 1 }
 0x3b2   :  { %1053 = vsyncpa [#allocation4], 1 }
 0x3b3   :  { %1054 = vsyncpa [#allocation5], 1 }

</bundles_post_ra>
